<compile_context>
chip_gen: v6e
topology: v6e:2x2x1
jax: 0.10.0
libtpu: 0.0.40
codegen_flags: <defaults>
</compile_context>

<pallas_src>
import functools

import numpy as np
import jax
import jax.numpy as jnp
from jax.experimental import pallas as pl
from jax.experimental.pallas import tpu as pltpu

_LANE = 128


def _round_up(v, m):
    return ((v + m - 1) // m) * m


# --------------------------------- kernel ------------------------------------

def _encoder_kernel(cols1_ref, mask1_ref, w1_ref, b1_ref,
                    w2_ref, b2_ref, mask2_ref, *rest, nres, H2, W2):
    """Whole FeatureEncoder forward for one batch element.

    cols1_ref : (1, Mslab, K1p) bf16  im2col of the raw input, rows ordered in
                conv2's phase-slab layout (p, i, j).
    mask1_ref : (Mslab, 1) f32        1.0 where the slab row is a real conv1
                output pixel, 0.0 on halo / padding rows.
    w1_ref    : (K1p, Cp)  bf16       conv1 weights, im2col-major.
    b1_ref    : (1, Cp)    f32
    w2_ref    : (9, Cp, Cp) bf16      conv2 per-tap weights.
    b2_ref    : (1, Cp)    f32
    mask2_ref : (M2, 1)    f32        1.0 on real output columns (r % Wp2 < W2).
    [wr3_ref  : (nres, 9, Cp, Rp) bf16, wr1_ref : (nres, Rp, Cp) bf16]
    o_ref     : (1, M2, Cp) f32
    ph_ref    : (Mslab, Cp) bf16      conv1 -> conv2 phase-slab buffer (VMEM).
    a_ref     : ((H2+2)*Wp2 + 2, Cp) f32  residual-stack padded activation.
    """
    if nres:
        wr3_ref, wr1_ref, o_ref, ph_ref, a_ref = rest
    else:
        o_ref, ph_ref, a_ref = rest

    Wp2 = W2 + 2                       # row stride of the padded / slab layouts
    Lph = (H2 + 1) * Wp2               # rows per conv2 input phase
    M2 = H2 * Wp2                      # conv2 / residual output slab rows

    # ---- conv1 (3x3, stride 2, pad 1) + bias + ReLU: one K=9*Cin matmul -----
    h1 = jnp.dot(cols1_ref[0], w1_ref[...],
                 preferred_element_type=jnp.float32)          # (Mslab, Cp) f32
    h1 = jnp.maximum(h1 + b1_ref[...], 0.0) * mask1_ref[...]  # zero halo rows
    ph_ref[...] = h1.astype(ph_ref.dtype)

    # ---- conv2 (3x3, stride 2, pad 1) + bias + ReLU: 9 shifted-tap matmuls --
    acc = None
    for dy in range(3):
        for dx in range(3):
            p = (dy % 2) * 2 + (dx % 2)                        # spatial phase
            start = p * Lph + (dy // 2) * Wp2 + (dx // 2)
            sub = ph_ref[start:start + M2, :]                  # (M2, Cp) bf16
            term = jnp.dot(sub, w2_ref[3 * dy + dx],
                           preferred_element_type=jnp.float32)
            acc = term if acc is None else acc + term
    h2 = jnp.maximum(acc + b2_ref[...], 0.0) * mask2_ref[...]  # zero junk cols

    # residual-stack buffer: zero borders, then write the interior.
    a_ref[...] = jnp.zeros_like(a_ref)
    a_ref[Wp2 + 1:Wp2 + 1 + M2, :] = h2

    # ---- residual stack, fully VMEM resident, updated in place --------------
    for l in range(nres):
        xr = jnp.maximum(a_ref[...], 0.0).astype(jnp.bfloat16)  # leading ReLU,
        acc = None                                               # hoisted once
        for dy in range(3):
            for dx in range(3):
                start = dy * Wp2 + dx
                term = jnp.dot(xr[start:start + M2, :],
                               wr3_ref[l, 3 * dy + dx],
                               preferred_element_type=jnp.float32)
                acc = term if acc is None else acc + term
        h = jnp.maximum(acc, 0.0).astype(jnp.bfloat16)           # inner ReLU
        r = jnp.dot(h, wr1_ref[l], preferred_element_type=jnp.float32)
        out = a_ref[Wp2 + 1:Wp2 + 1 + M2, :] + r                 # residual add
        a_ref[Wp2 + 1:Wp2 + 1 + M2, :] = out * mask2_ref[...]    # keep halo 0

    # ResidualStack trailing ReLU (also correct for nres == 0).
    o_ref[0] = jnp.maximum(a_ref[Wp2 + 1:Wp2 + 1 + M2, :], 0.0)


# ------------------------------ weight prep ----------------------------------

def _prep_conv1_w(w_oihw, k1p, cp):
    """(Cout, Cin, 3, 3) -> (k1p, cp) bf16, rows ordered (dy, dx, cin)."""
    cout, cin, kh, kw = w_oihw.shape
    w = jnp.transpose(w_oihw, (2, 3, 1, 0)).reshape(kh * kw * cin, cout)
    w = jnp.pad(w, ((0, k1p - kh * kw * cin), (0, cp - cout)))
    return w.astype(jnp.bfloat16)


def _prep_w3x3(w_oihw, cinp, coutp):
    """(Cout, Cin, 3, 3) -> (9, cinp, coutp) bf16, tap-major (dy*3+dx)."""
    cout, cin, kh, kw = w_oihw.shape
    w = jnp.transpose(w_oihw, (2, 3, 1, 0)).reshape(kh * kw, cin, cout)
    return jnp.pad(w, ((0, 0), (0, cinp - cin), (0, coutp - cout))) \
              .astype(jnp.bfloat16)


def _prep_w1x1(w, rinp, coutp):
    """(Cout, Cin, 1, 1) -> (rinp, coutp) bf16."""
    cout, cin = w.shape[:2]
    m = jnp.transpose(w[:, :, 0, 0])                     # (cin, cout)
    return jnp.pad(m, ((0, rinp - cin), (0, coutp - cout))).astype(jnp.bfloat16)


def _prep_bias(b, cp):
    return jnp.pad(b, (0, cp - b.shape[0])).reshape(1, cp).astype(jnp.float32)


# ------------------------- parameters & forward ------------------------------

def init_params(key, in_channels, hidden_dim, num_residual_layers,
                residual_hidden_dim):
    """Deterministic PyTorch-shaped parameters (OIHW conv weights)."""
    def conv_w(k, cout, cin, ksz):
        bound = 1.0 / np.sqrt(cin * ksz * ksz)
        return jax.random.uniform(k, (cout, cin, ksz, ksz), jnp.float32,
                                  -bound, bound)

    def conv_b(k, cout, cin, ksz):
        bound = 1.0 / np.sqrt(cin * ksz * ksz)
        return jax.random.uniform(k, (cout,), jnp.float32, -bound, bound)

    keys = jax.random.split(key, 4 + 2 * num_residual_layers)
    params = {
        "conv1_w": conv_w(keys[0], hidden_dim, in_channels, 3),
        "conv1_b": conv_b(keys[1], hidden_dim, in_channels, 3),
        "conv2_w": conv_w(keys[2], hidden_dim, hidden_dim, 3),
        "conv2_b": conv_b(keys[3], hidden_dim, hidden_dim, 3),
        "res": [],
    }
    for i in range(num_residual_layers):
        w3 = conv_w(keys[4 + 2 * i], residual_hidden_dim, hidden_dim, 3)
        w1 = conv_w(keys[5 + 2 * i], hidden_dim, residual_hidden_dim, 1)
        params["res"].append((w3, w1))
    return params


def feature_encoder_forward(params, x_nchw):
    """FeatureEncoder.forward: NCHW in, NCHW out (spatial reduced 4x)."""
    hidden = params["conv1_w"].shape[0]
    nres = len(params["res"])
    cp = _round_up(max(hidden, _LANE), _LANE)          # lane-dense (VMEM only)
    rh = params["res"][0][0].shape[0] if nres else 1
    rp = _round_up(max(rh, _LANE), _LANE)

    N, Cin, H, W = x_nchw.shape
    if H % 4 or W % 4:
        # TODO(synk): odd / non-multiple-of-4 spatial dims not supported.
        raise NotImplementedError("H and W must be divisible by 4")
    H1, W1 = H // 2, W // 2
    H2, W2 = H1 // 2, W1 // 2
    Wp2 = W2 + 2
    Lph = (H2 + 1) * Wp2
    Mslab = 4 * Lph
    M2 = H2 * Wp2
    k1 = 9 * Cin
    k1p = _round_up(k1, _LANE)

    # ---- one-time glue on the RAW input only (tiny): im2col at conv1's ------
    # ---- output resolution, rows ordered in conv2's phase-slab layout. ------
    x = jnp.transpose(x_nchw, (0, 2, 3, 1)).astype(jnp.bfloat16)   # NHWC
    xpad = jnp.pad(x, ((0, 0), (1, 1), (1, 1), (0, 0)))
    taps = [xpad[:, dy:dy + 2 * H1:2, dx:dx + 2 * W1:2, :]
            for dy in range(3) for dx in range(3)]
    patches = jnp.concatenate(taps, axis=-1)                 # (N, H1, W1, 9Cin)
    ppad = jnp.pad(patches, ((0, 0), (1, 1), (1, 3), (0, k1p - k1)))
    phases = [ppad[:, py::2, px::2, :] for py in (0, 1) for px in (0, 1)]
    cols1 = jnp.stack(phases, axis=1).reshape(N, Mslab, k1p)  # (N, Mslab, K1p)

    # host-built 0/1 row masks (static, tiny).
    m1 = np.zeros((Mslab, 1), np.float32)
    for p in range(4):
        py, px = p // 2, p % 2
        for i in range(H2 + 1):
            y = 2 * i + py - 1
            if not (0 <= y < H1):
                continue
            for j in range(Wp2):
                xc = 2 * j + px - 1
                if 0 <= xc < W1:
                    m1[p * Lph + i * Wp2 + j, 0] = 1.0
    mask1 = jnp.asarray(m1)
    mask2 = jnp.asarray(np.asarray(
        [1.0 if (r % Wp2) < W2 else 0.0 for r in range(M2)],
        np.float32).reshape(M2, 1))

    # weights (tiny, lane-padded).
    w1 = _prep_conv1_w(params["conv1_w"], k1p, cp)
    b1 = _prep_bias(params["conv1_b"], cp)
    w2 = _prep_w3x3(params["conv2_w"], cp, cp)
    b2 = _prep_bias(params["conv2_b"], cp)

    args = [cols1, mask1, w1, b1, w2, b2, mask2]
    in_specs = [
        pl.BlockSpec((1, Mslab, k1p), lambda n: (n, 0, 0)),
        pl.BlockSpec((Mslab, 1), lambda n: (0, 0)),
        pl.BlockSpec((k1p, cp), lambda n: (0, 0)),
        pl.BlockSpec((1, cp), lambda n: (0, 0)),
        pl.BlockSpec((9, cp, cp), lambda n: (0, 0, 0)),
        pl.BlockSpec((1, cp), lambda n: (0, 0)),
        pl.BlockSpec((M2, 1), lambda n: (0, 0)),
    ]
    if nres:
        wr3 = jnp.stack([_prep_w3x3(w3, cp, rp) for (w3, _) in params["res"]])
        wr1 = jnp.stack([_prep_w1x1(wk, rp, cp) for (_, wk) in params["res"]])
        args += [wr3, wr1]
        in_specs += [
            pl.BlockSpec((nres, 9, cp, rp), lambda n: (0, 0, 0, 0)),
            pl.BlockSpec((nres, rp, cp), lambda n: (0, 0, 0)),
        ]

    flops = 2 * N * (Mslab * k1p * cp + 9 * M2 * cp * cp
                     + nres * (9 * M2 * cp * rp + M2 * rp * cp))
    bytes_accessed = int(cols1.size * 2 + w1.size * 2 + w2.size * 2
                         + (args[7].size * 2 + args[8].size * 2 if nres else 0)
                         + N * M2 * cp * 4)

    out = pl.pallas_call(
        functools.partial(_encoder_kernel, nres=nres, H2=H2, W2=W2),
        out_shape=jax.ShapeDtypeStruct((N, M2, cp), jnp.float32),
        grid=(N,),
        in_specs=in_specs,
        out_specs=pl.BlockSpec((1, M2, cp), lambda n: (n, 0, 0)),
        scratch_shapes=[
            pltpu.VMEM((Mslab, cp), jnp.bfloat16),            # conv1 -> conv2
            pltpu.VMEM(((H2 + 2) * Wp2 + 2, cp), jnp.float32),  # residual buf
        ],
        compiler_params=pltpu.CompilerParams(
            dimension_semantics=("parallel",),
            vmem_limit_bytes=32 * 1024 * 1024),
        cost_estimate=pl.CostEstimate(flops=flops, transcendentals=0,
                                      bytes_accessed=bytes_accessed),
    )(*args)

    # final (tiny) output glue: drop junk columns / zero lanes, back to NCHW.
    out = out.reshape(N, H2, Wp2, cp)[:, :, :W2, :hidden]
    return jnp.transpose(out, (0, 3, 1, 2))


# -------------------------------- reference ----------------------------------

def _ref_forward(params, x_nchw):
    def conv(x, w, b=None, stride=1, pad=1):
        out = jax.lax.conv_general_dilated(
            x, w, (stride, stride), [(pad, pad), (pad, pad)],
            dimension_numbers=("NCHW", "OIHW", "NCHW"))
        if b is not None:
            out = out + b[None, :, None, None]
        return out

    x = jax.nn.relu(conv(x_nchw, params["conv1_w"], params["conv1_b"], 2, 1))
    x = jax.nn.relu(conv(x, params["conv2_w"], params["conv2_b"], 2, 1))
    for (w3, w1) in params["res"]:
        h = conv(jax.nn.relu(x), w3, None, 1, 1)
        h = conv(jax.nn.relu(h), w1, None, 1, 0)
        x = x + h
    return jax.nn.relu(x)


# ---------------------------------- main --------------------------------------

if __name__ == "__main__":
    key = jax.random.PRNGKey(0)
    kx, kp = jax.random.split(key)

    N, Cin, H, W = 2, 4, 16, 16
    hidden_dim, num_res_layers, res_hidden = 32, 2, 8

    x = jax.random.normal(kx, (N, Cin, H, W), jnp.float32)
    params = init_params(kp, Cin, hidden_dim, num_res_layers, res_hidden)

    ref = _ref_forward(params, x)

    out = jax.block_until_ready(jax.jit(feature_encoder_forward)(params, x))
    assert out.shape == (N, hidden_dim, H // 4, W // 4), out.shape
    # bf16 matmul operands with f32 accumulation vs. the f32 reference.
    np.testing.assert_allclose(np.asarray(out), np.asarray(ref),
                               rtol=5e-2, atol=5e-2)

    print("KERNEL_OK")
</pallas_src>

<mosaic_0001>
module attributes {stable_mosaic.version = 11 : i64} {
  func.func @_encoder_kernel(%arg0: i32, %arg1: memref<1x120x128xbf16, #tpu.memory_space<vmem>>, %arg2: memref<120x1xf32, #tpu.memory_space<vmem>>, %arg3: memref<128x128xbf16, #tpu.memory_space<vmem>>, %arg4: memref<1x128xf32, #tpu.memory_space<vmem>>, %arg5: memref<9x128x128xbf16, #tpu.memory_space<vmem>>, %arg6: memref<1x128xf32, #tpu.memory_space<vmem>>, %arg7: memref<24x1xf32, #tpu.memory_space<vmem>>, %arg8: memref<2x9x128x128xbf16, #tpu.memory_space<vmem>>, %arg9: memref<2x128x128xbf16, #tpu.memory_space<vmem>>, %arg10: memref<1x24x128xf32, #tpu.memory_space<vmem>>, %arg11: memref<120x128xbf16, #tpu.memory_space<vmem>>, %arg12: memref<38x128xf32, #tpu.memory_space<vmem>>) attributes {dimension_semantics = [#tpu.dimension_semantics<parallel>], iteration_bounds = array<i64: 2>, scalar_prefetch = 0 : i64, scratch_operands = 2 : i64, tpu.core_type = #tpu.core_type<tc>, window_params = [{transform_indices = @transform_0, window_bounds = array<i64: 1, 120, 128>}, {pipeline_mode = #tpu.pipeline_mode<synchronous>, transform_indices = @transform_1, window_bounds = array<i64: 120, 1>}, {pipeline_mode = #tpu.pipeline_mode<synchronous>, transform_indices = @transform_2, window_bounds = array<i64: 128, 128>}, {pipeline_mode = #tpu.pipeline_mode<synchronous>, transform_indices = @transform_3, window_bounds = array<i64: 1, 128>}, {pipeline_mode = #tpu.pipeline_mode<synchronous>, transform_indices = @transform_4, window_bounds = array<i64: 9, 128, 128>}, {pipeline_mode = #tpu.pipeline_mode<synchronous>, transform_indices = @transform_5, window_bounds = array<i64: 1, 128>}, {pipeline_mode = #tpu.pipeline_mode<synchronous>, transform_indices = @transform_6, window_bounds = array<i64: 24, 1>}, {pipeline_mode = #tpu.pipeline_mode<synchronous>, transform_indices = @transform_7, window_bounds = array<i64: 2, 9, 128, 128>}, {pipeline_mode = #tpu.pipeline_mode<synchronous>, transform_indices = @transform_8, window_bounds = array<i64: 2, 128, 128>}, {transform_indices = @transform_9, window_bounds = array<i64: 1, 24, 128>}]} {
    %c0 = arith.constant 0 : index
    %c0_0 = arith.constant 0 : index
    %c0_1 = arith.constant 0 : index
    %0 = vector.load %arg1[%c0, %c0_0, %c0_1] : memref<1x120x128xbf16, #tpu.memory_space<vmem>>, vector<1x120x128xbf16>
    %1 = vector.shape_cast %0 : vector<1x120x128xbf16> to vector<120x128xbf16>
    %c0_2 = arith.constant 0 : index
    %c0_3 = arith.constant 0 : index
    %2 = vector.load %arg3[%c0_2, %c0_3] : memref<128x128xbf16, #tpu.memory_space<vmem>>, vector<128x128xbf16>
    %cst = arith.constant dense<0.000000e+00> : vector<120x128xf32>
    %3 = tpu.matmul %1, %2, %cst {dimension_numbers = #tpu.dot_dimension_numbers<[1], [0], [0], [1], [0, 0, 1, 1], [], []>} : vector<120x128xbf16>, vector<128x128xbf16>, vector<120x128xf32> -> vector<120x128xf32>
    %c0_4 = arith.constant 0 : index
    %c0_5 = arith.constant 0 : index
    %4 = vector.load %arg4[%c0_4, %c0_5] : memref<1x128xf32, #tpu.memory_space<vmem>>, vector<1x128xf32>
    %5 = vector.broadcast %4 : vector<1x128xf32> to vector<120x128xf32>
    %6 = arith.addf %3, %5 : vector<120x128xf32>
    %cst_6 = arith.constant 0.000000e+00 : f32
    %7 = vector.broadcast %cst_6 : f32 to vector<120x128xf32>
    %8 = arith.maximumf %6, %7 : vector<120x128xf32>
    %c0_7 = arith.constant 0 : index
    %c0_8 = arith.constant 0 : index
    %9 = vector.load %arg2[%c0_7, %c0_8] : memref<120x1xf32, #tpu.memory_space<vmem>>, vector<120x1xf32>
    %10 = vector.broadcast %9 : vector<120x1xf32> to vector<120x128xf32>
    %11 = arith.mulf %8, %10 : vector<120x128xf32>
    %12 = arith.truncf %11 : vector<120x128xf32> to vector<120x128xbf16>
    %c0_9 = arith.constant 0 : index
    %c0_10 = arith.constant 0 : index
    %13 = vector.load %arg11[%c0_9, %c0_10] : memref<120x128xbf16, #tpu.memory_space<vmem>>, vector<120x128xbf16>
    tpu.vector_store %arg11[%c0_9, %c0_10], %12 {strides = array<i32>} : memref<120x128xbf16, #tpu.memory_space<vmem>>, vector<120x128xbf16>,
    %c0_11 = arith.constant 0 : index
    %c0_12 = arith.constant 0 : index
    %14 = vector.load %arg11[%c0_11, %c0_12] : memref<120x128xbf16, #tpu.memory_space<vmem>>, vector<24x128xbf16>
    %c0_13 = arith.constant 0 : index
    %c0_14 = arith.constant 0 : index
    %c0_15 = arith.constant 0 : index
    %15 = vector.load %arg5[%c0_13, %c0_14, %c0_15] : memref<9x128x128xbf16, #tpu.memory_space<vmem>>, vector<1x128x128xbf16>
    %16 = vector.shape_cast %15 : vector<1x128x128xbf16> to vector<128x128xbf16>
    %cst_16 = arith.constant dense<0.000000e+00> : vector<24x128xf32>
    %17 = tpu.matmul %14, %16, %cst_16 {dimension_numbers = #tpu.dot_dimension_numbers<[1], [0], [0], [1], [0, 0, 1, 1], [], []>} : vector<24x128xbf16>, vector<128x128xbf16>, vector<24x128xf32> -> vector<24x128xf32>
    %c30 = arith.constant 30 : index
    %c0_17 = arith.constant 0 : index
    %18 = vector.load %arg11[%c30, %c0_17] : memref<120x128xbf16, #tpu.memory_space<vmem>>, vector<24x128xbf16>
    %c1 = arith.constant 1 : index
    %c0_18 = arith.constant 0 : index
    %c0_19 = arith.constant 0 : index
    %19 = vector.load %arg5[%c1, %c0_18, %c0_19] : memref<9x128x128xbf16, #tpu.memory_space<vmem>>, vector<1x128x128xbf16>
    %20 = vector.shape_cast %19 : vector<1x128x128xbf16> to vector<128x128xbf16>
    %cst_20 = arith.constant dense<0.000000e+00> : vector<24x128xf32>
    %21 = tpu.matmul %18, %20, %cst_20 {dimension_numbers = #tpu.dot_dimension_numbers<[1], [0], [0], [1], [0, 0, 1, 1], [], []>} : vector<24x128xbf16>, vector<128x128xbf16>, vector<24x128xf32> -> vector<24x128xf32>
    %22 = arith.addf %17, %21 : vector<24x128xf32>
    %c1_21 = arith.constant 1 : index
    %c0_22 = arith.constant 0 : index
    %23 = vector.load %arg11[%c1_21, %c0_22] : memref<120x128xbf16, #tpu.memory_space<vmem>>, vector<24x128xbf16>
    %c2 = arith.constant 2 : index
    %c0_23 = arith.constant 0 : index
    %c0_24 = arith.constant 0 : index
    %24 = vector.load %arg5[%c2, %c0_23, %c0_24] : memref<9x128x128xbf16, #tpu.memory_space<vmem>>, vector<1x128x128xbf16>
    %25 = vector.shape_cast %24 : vector<1x128x128xbf16> to vector<128x128xbf16>
    %cst_25 = arith.constant dense<0.000000e+00> : vector<24x128xf32>
    %26 = tpu.matmul %23, %25, %cst_25 {dimension_numbers = #tpu.dot_dimension_numbers<[1], [0], [0], [1], [0, 0, 1, 1], [], []>} : vector<24x128xbf16>, vector<128x128xbf16>, vector<24x128xf32> -> vector<24x128xf32>
    %27 = arith.addf %22, %26 : vector<24x128xf32>
    %c60 = arith.constant 60 : index
    %c0_26 = arith.constant 0 : index
    %28 = vector.load %arg11[%c60, %c0_26] : memref<120x128xbf16, #tpu.memory_space<vmem>>, vector<24x128xbf16>
    %c3 = arith.constant 3 : index
    %c0_27 = arith.constant 0 : index
    %c0_28 = arith.constant 0 : index
    %29 = vector.load %arg5[%c3, %c0_27, %c0_28] : memref<9x128x128xbf16, #tpu.memory_space<vmem>>, vector<1x128x128xbf16>
    %30 = vector.shape_cast %29 : vector<1x128x128xbf16> to vector<128x128xbf16>
    %cst_29 = arith.constant dense<0.000000e+00> : vector<24x128xf32>
    %31 = tpu.matmul %28, %30, %cst_29 {dimension_numbers = #tpu.dot_dimension_numbers<[1], [0], [0], [1], [0, 0, 1, 1], [], []>} : vector<24x128xbf16>, vector<128x128xbf16>, vector<24x128xf32> -> vector<24x128xf32>
    %32 = arith.addf %27, %31 : vector<24x128xf32>
    %c90 = arith.constant 90 : index
    %c0_30 = arith.constant 0 : index
    %33 = vector.load %arg11[%c90, %c0_30] : memref<120x128xbf16, #tpu.memory_space<vmem>>, vector<24x128xbf16>
    %c4 = arith.constant 4 : index
    %c0_31 = arith.constant 0 : index
    %c0_32 = arith.constant 0 : index
    %34 = vector.load %arg5[%c4, %c0_31, %c0_32] : memref<9x128x128xbf16, #tpu.memory_space<vmem>>, vector<1x128x128xbf16>
    %35 = vector.shape_cast %34 : vector<1x128x128xbf16> to vector<128x128xbf16>
    %cst_33 = arith.constant dense<0.000000e+00> : vector<24x128xf32>
    %36 = tpu.matmul %33, %35, %cst_33 {dimension_numbers = #tpu.dot_dimension_numbers<[1], [0], [0], [1], [0, 0, 1, 1], [], []>} : vector<24x128xbf16>, vector<128x128xbf16>, vector<24x128xf32> -> vector<24x128xf32>
    %37 = arith.addf %32, %36 : vector<24x128xf32>
    %c61 = arith.constant 61 : index
    %c0_34 = arith.constant 0 : index
    %38 = vector.load %arg11[%c61, %c0_34] : memref<120x128xbf16, #tpu.memory_space<vmem>>, vector<24x128xbf16>
    %c5 = arith.constant 5 : index
    %c0_35 = arith.constant 0 : index
    %c0_36 = arith.constant 0 : index
    %39 = vector.load %arg5[%c5, %c0_35, %c0_36] : memref<9x128x128xbf16, #tpu.memory_space<vmem>>, vector<1x128x128xbf16>
    %40 = vector.shape_cast %39 : vector<1x128x128xbf16> to vector<128x128xbf16>
    %cst_37 = arith.constant dense<0.000000e+00> : vector<24x128xf32>
    %41 = tpu.matmul %38, %40, %cst_37 {dimension_numbers = #tpu.dot_dimension_numbers<[1], [0], [0], [1], [0, 0, 1, 1], [], []>} : vector<24x128xbf16>, vector<128x128xbf16>, vector<24x128xf32> -> vector<24x128xf32>
    %42 = arith.addf %37, %41 : vector<24x128xf32>
    %c6 = arith.constant 6 : index
    %c0_38 = arith.constant 0 : index
    %43 = vector.load %arg11[%c6, %c0_38] : memref<120x128xbf16, #tpu.memory_space<vmem>>, vector<24x128xbf16>
    %c6_39 = arith.constant 6 : index
    %c0_40 = arith.constant 0 : index
    %c0_41 = arith.constant 0 : index
    %44 = vector.load %arg5[%c6_39, %c0_40, %c0_41] : memref<9x128x128xbf16, #tpu.memory_space<vmem>>, vector<1x128x128xbf16>
    %45 = vector.shape_cast %44 : vector<1x128x128xbf16> to vector<128x128xbf16>
    %cst_42 = arith.constant dense<0.000000e+00> : vector<24x128xf32>
    %46 = tpu.matmul %43, %45, %cst_42 {dimension_numbers = #tpu.dot_dimension_numbers<[1], [0], [0], [1], [0, 0, 1, 1], [], []>} : vector<24x128xbf16>, vector<128x128xbf16>, vector<24x128xf32> -> vector<24x128xf32>
    %47 = arith.addf %42, %46 : vector<24x128xf32>
    %c36 = arith.constant 36 : index
    %c0_43 = arith.constant 0 : index
    %48 = vector.load %arg11[%c36, %c0_43] : memref<120x128xbf16, #tpu.memory_space<vmem>>, vector<24x128xbf16>
    %c7 = arith.constant 7 : index
    %c0_44 = arith.constant 0 : index
    %c0_45 = arith.constant 0 : index
    %49 = vector.load %arg5[%c7, %c0_44, %c0_45] : memref<9x128x128xbf16, #tpu.memory_space<vmem>>, vector<1x128x128xbf16>
    %50 = vector.shape_cast %49 : vector<1x128x128xbf16> to vector<128x128xbf16>
    %cst_46 = arith.constant dense<0.000000e+00> : vector<24x128xf32>
    %51 = tpu.matmul %48, %50, %cst_46 {dimension_numbers = #tpu.dot_dimension_numbers<[1], [0], [0], [1], [0, 0, 1, 1], [], []>} : vector<24x128xbf16>, vector<128x128xbf16>, vector<24x128xf32> -> vector<24x128xf32>
    %52 = arith.addf %47, %51 : vector<24x128xf32>
    %c7_47 = arith.constant 7 : index
    %c0_48 = arith.constant 0 : index
    %53 = vector.load %arg11[%c7_47, %c0_48] : memref<120x128xbf16, #tpu.memory_space<vmem>>, vector<24x128xbf16>
    %c8 = arith.constant 8 : index
    %c0_49 = arith.constant 0 : index
    %c0_50 = arith.constant 0 : index
    %54 = vector.load %arg5[%c8, %c0_49, %c0_50] : memref<9x128x128xbf16, #tpu.memory_space<vmem>>, vector<1x128x128xbf16>
    %55 = vector.shape_cast %54 : vector<1x128x128xbf16> to vector<128x128xbf16>
    %cst_51 = arith.constant dense<0.000000e+00> : vector<24x128xf32>
    %56 = tpu.matmul %53, %55, %cst_51 {dimension_numbers = #tpu.dot_dimension_numbers<[1], [0], [0], [1], [0, 0, 1, 1], [], []>} : vector<24x128xbf16>, vector<128x128xbf16>, vector<24x128xf32> -> vector<24x128xf32>
    %57 = arith.addf %52, %56 : vector<24x128xf32>
    %c0_52 = arith.constant 0 : index
    %c0_53 = arith.constant 0 : index
    %58 = vector.load %arg6[%c0_52, %c0_53] : memref<1x128xf32, #tpu.memory_space<vmem>>, vector<1x128xf32>
    %59 = vector.broadcast %58 : vector<1x128xf32> to vector<24x128xf32>
    %60 = arith.addf %57, %59 : vector<24x128xf32>
    %cst_54 = arith.constant 0.000000e+00 : f32
    %61 = vector.broadcast %cst_54 : f32 to vector<24x128xf32>
    %62 = arith.maximumf %60, %61 : vector<24x128xf32>
    %c0_55 = arith.constant 0 : index
    %c0_56 = arith.constant 0 : index
    %63 = vector.load %arg7[%c0_55, %c0_56] : memref<24x1xf32, #tpu.memory_space<vmem>>, vector<24x1xf32>
    %64 = vector.broadcast %63 : vector<24x1xf32> to vector<24x128xf32>
    %65 = arith.mulf %62, %64 : vector<24x128xf32>
    %cst_57 = arith.constant 0.000000e+00 : f32
    %66 = vector.broadcast %cst_57 : f32 to vector<38x128xf32>
    %c0_58 = arith.constant 0 : index
    %c0_59 = arith.constant 0 : index
    %67 = vector.load %arg12[%c0_58, %c0_59] : memref<38x128xf32, #tpu.memory_space<vmem>>, vector<38x128xf32>
    tpu.vector_store %arg12[%c0_58, %c0_59], %66 {strides = array<i32>} : memref<38x128xf32, #tpu.memory_space<vmem>>, vector<38x128xf32>,
    %c7_60 = arith.constant 7 : index
    %c0_61 = arith.constant 0 : index
    %68 = vector.load %arg12[%c7_60, %c0_61] : memref<38x128xf32, #tpu.memory_space<vmem>>, vector<24x128xf32>
    tpu.vector_store %arg12[%c7_60, %c0_61], %65 {strides = array<i32>} : memref<38x128xf32, #tpu.memory_space<vmem>>, vector<24x128xf32>,
    %c0_62 = arith.constant 0 : index
    %c0_63 = arith.constant 0 : index
    %69 = vector.load %arg12[%c0_62, %c0_63] : memref<38x128xf32, #tpu.memory_space<vmem>>, vector<38x128xf32>
    %cst_64 = arith.constant 0.000000e+00 : f32
    %70 = vector.broadcast %cst_64 : f32 to vector<38x128xf32>
    %71 = arith.maximumf %69, %70 : vector<38x128xf32>
    %72 = arith.truncf %71 : vector<38x128xf32> to vector<38x128xbf16>
    %73 = vector.extract_strided_slice %72 {offsets = [0, 0], sizes = [24, 128], strides = [1, 1]} : vector<38x128xbf16> to vector<24x128xbf16>
    %c0_65 = arith.constant 0 : index
    %c0_66 = arith.constant 0 : index
    %c0_67 = arith.constant 0 : index
    %c0_68 = arith.constant 0 : index
    %74 = vector.load %arg8[%c0_65, %c0_66, %c0_67, %c0_68] : memref<2x9x128x128xbf16, #tpu.memory_space<vmem>>, vector<1x1x128x128xbf16>
    %75 = vector.shape_cast %74 : vector<1x1x128x128xbf16> to vector<128x128xbf16>
    %cst_69 = arith.constant dense<0.000000e+00> : vector<24x128xf32>
    %76 = tpu.matmul %73, %75, %cst_69 {dimension_numbers = #tpu.dot_dimension_numbers<[1], [0], [0], [1], [0, 0, 1, 1], [], []>} : vector<24x128xbf16>, vector<128x128xbf16>, vector<24x128xf32> -> vector<24x128xf32>
    %77 = vector.extract_strided_slice %72 {offsets = [1, 0], sizes = [24, 128], strides = [1, 1]} : vector<38x128xbf16> to vector<24x128xbf16>
    %c0_70 = arith.constant 0 : index
    %c1_71 = arith.constant 1 : index
    %c0_72 = arith.constant 0 : index
    %c0_73 = arith.constant 0 : index
    %78 = vector.load %arg8[%c0_70, %c1_71, %c0_72, %c0_73] : memref<2x9x128x128xbf16, #tpu.memory_space<vmem>>, vector<1x1x128x128xbf16>
    %79 = vector.shape_cast %78 : vector<1x1x128x128xbf16> to vector<128x128xbf16>
    %cst_74 = arith.constant dense<0.000000e+00> : vector<24x128xf32>
    %80 = tpu.matmul %77, %79, %cst_74 {dimension_numbers = #tpu.dot_dimension_numbers<[1], [0], [0], [1], [0, 0, 1, 1], [], []>} : vector<24x128xbf16>, vector<128x128xbf16>, vector<24x128xf32> -> vector<24x128xf32>
    %81 = arith.addf %76, %80 : vector<24x128xf32>
    %82 = vector.extract_strided_slice %72 {offsets = [2, 0], sizes = [24, 128], strides = [1, 1]} : vector<38x128xbf16> to vector<24x128xbf16>
    %c0_75 = arith.constant 0 : index
    %c2_76 = arith.constant 2 : index
    %c0_77 = arith.constant 0 : index
    %c0_78 = arith.constant 0 : index
    %83 = vector.load %arg8[%c0_75, %c2_76, %c0_77, %c0_78] : memref<2x9x128x128xbf16, #tpu.memory_space<vmem>>, vector<1x1x128x128xbf16>
    %84 = vector.shape_cast %83 : vector<1x1x128x128xbf16> to vector<128x128xbf16>
    %cst_79 = arith.constant dense<0.000000e+00> : vector<24x128xf32>
    %85 = tpu.matmul %82, %84, %cst_79 {dimension_numbers = #tpu.dot_dimension_numbers<[1], [0], [0], [1], [0, 0, 1, 1], [], []>} : vector<24x128xbf16>, vector<128x128xbf16>, vector<24x128xf32> -> vector<24x128xf32>
    %86 = arith.addf %81, %85 : vector<24x128xf32>
    %87 = vector.extract_strided_slice %72 {offsets = [6, 0], sizes = [24, 128], strides = [1, 1]} : vector<38x128xbf16> to vector<24x128xbf16>
    %c0_80 = arith.constant 0 : index
    %c3_81 = arith.constant 3 : index
    %c0_82 = arith.constant 0 : index
    %c0_83 = arith.constant 0 : index
    %88 = vector.load %arg8[%c0_80, %c3_81, %c0_82, %c0_83] : memref<2x9x128x128xbf16, #tpu.memory_space<vmem>>, vector<1x1x128x128xbf16>
    %89 = vector.shape_cast %88 : vector<1x1x128x128xbf16> to vector<128x128xbf16>
    %cst_84 = arith.constant dense<0.000000e+00> : vector<24x128xf32>
    %90 = tpu.matmul %87, %89, %cst_84 {dimension_numbers = #tpu.dot_dimension_numbers<[1], [0], [0], [1], [0, 0, 1, 1], [], []>} : vector<24x128xbf16>, vector<128x128xbf16>, vector<24x128xf32> -> vector<24x128xf32>
    %91 = arith.addf %86, %90 : vector<24x128xf32>
    %92 = vector.extract_strided_slice %72 {offsets = [7, 0], sizes = [24, 128], strides = [1, 1]} : vector<38x128xbf16> to vector<24x128xbf16>
    %c0_85 = arith.constant 0 : index
    %c4_86 = arith.constant 4 : index
    %c0_87 = arith.constant 0 : index
    %c0_88 = arith.constant 0 : index
    %93 = vector.load %arg8[%c0_85, %c4_86, %c0_87, %c0_88] : memref<2x9x128x128xbf16, #tpu.memory_space<vmem>>, vector<1x1x128x128xbf16>
    %94 = vector.shape_cast %93 : vector<1x1x128x128xbf16> to vector<128x128xbf16>
    %cst_89 = arith.constant dense<0.000000e+00> : vector<24x128xf32>
    %95 = tpu.matmul %92, %94, %cst_89 {dimension_numbers = #tpu.dot_dimension_numbers<[1], [0], [0], [1], [0, 0, 1, 1], [], []>} : vector<24x128xbf16>, vector<128x128xbf16>, vector<24x128xf32> -> vector<24x128xf32>
    %96 = arith.addf %91, %95 : vector<24x128xf32>
    %97 = vector.extract_strided_slice %72 {offsets = [8, 0], sizes = [24, 128], strides = [1, 1]} : vector<38x128xbf16> to vector<24x128xbf16>
    %c0_90 = arith.constant 0 : index
    %c5_91 = arith.constant 5 : index
    %c0_92 = arith.constant 0 : index
    %c0_93 = arith.constant 0 : index
    %98 = vector.load %arg8[%c0_90, %c5_91, %c0_92, %c0_93] : memref<2x9x128x128xbf16, #tpu.memory_space<vmem>>, vector<1x1x128x128xbf16>
    %99 = vector.shape_cast %98 : vector<1x1x128x128xbf16> to vector<128x128xbf16>
    %cst_94 = arith.constant dense<0.000000e+00> : vector<24x128xf32>
    %100 = tpu.matmul %97, %99, %cst_94 {dimension_numbers = #tpu.dot_dimension_numbers<[1], [0], [0], [1], [0, 0, 1, 1], [], []>} : vector<24x128xbf16>, vector<128x128xbf16>, vector<24x128xf32> -> vector<24x128xf32>
    %101 = arith.addf %96, %100 : vector<24x128xf32>
    %102 = vector.extract_strided_slice %72 {offsets = [12, 0], sizes = [24, 128], strides = [1, 1]} : vector<38x128xbf16> to vector<24x128xbf16>
    %c0_95 = arith.constant 0 : index
    %c6_96 = arith.constant 6 : index
    %c0_97 = arith.constant 0 : index
    %c0_98 = arith.constant 0 : index
    %103 = vector.load %arg8[%c0_95, %c6_96, %c0_97, %c0_98] : memref<2x9x128x128xbf16, #tpu.memory_space<vmem>>, vector<1x1x128x128xbf16>
    %104 = vector.shape_cast %103 : vector<1x1x128x128xbf16> to vector<128x128xbf16>
    %cst_99 = arith.constant dense<0.000000e+00> : vector<24x128xf32>
    %105 = tpu.matmul %102, %104, %cst_99 {dimension_numbers = #tpu.dot_dimension_numbers<[1], [0], [0], [1], [0, 0, 1, 1], [], []>} : vector<24x128xbf16>, vector<128x128xbf16>, vector<24x128xf32> -> vector<24x128xf32>
    %106 = arith.addf %101, %105 : vector<24x128xf32>
    %107 = vector.extract_strided_slice %72 {offsets = [13, 0], sizes = [24, 128], strides = [1, 1]} : vector<38x128xbf16> to vector<24x128xbf16>
    %c0_100 = arith.constant 0 : index
    %c7_101 = arith.constant 7 : index
    %c0_102 = arith.constant 0 : index
    %c0_103 = arith.constant 0 : index
    %108 = vector.load %arg8[%c0_100, %c7_101, %c0_102, %c0_103] : memref<2x9x128x128xbf16, #tpu.memory_space<vmem>>, vector<1x1x128x128xbf16>
    %109 = vector.shape_cast %108 : vector<1x1x128x128xbf16> to vector<128x128xbf16>
    %cst_104 = arith.constant dense<0.000000e+00> : vector<24x128xf32>
    %110 = tpu.matmul %107, %109, %cst_104 {dimension_numbers = #tpu.dot_dimension_numbers<[1], [0], [0], [1], [0, 0, 1, 1], [], []>} : vector<24x128xbf16>, vector<128x128xbf16>, vector<24x128xf32> -> vector<24x128xf32>
    %111 = arith.addf %106, %110 : vector<24x128xf32>
    %112 = vector.extract_strided_slice %72 {offsets = [14, 0], sizes = [24, 128], strides = [1, 1]} : vector<38x128xbf16> to vector<24x128xbf16>
    %c0_105 = arith.constant 0 : index
    %c8_106 = arith.constant 8 : index
    %c0_107 = arith.constant 0 : index
    %c0_108 = arith.constant 0 : index
    %113 = vector.load %arg8[%c0_105, %c8_106, %c0_107, %c0_108] : memref<2x9x128x128xbf16, #tpu.memory_space<vmem>>, vector<1x1x128x128xbf16>
    %114 = vector.shape_cast %113 : vector<1x1x128x128xbf16> to vector<128x128xbf16>
    %cst_109 = arith.constant dense<0.000000e+00> : vector<24x128xf32>
    %115 = tpu.matmul %112, %114, %cst_109 {dimension_numbers = #tpu.dot_dimension_numbers<[1], [0], [0], [1], [0, 0, 1, 1], [], []>} : vector<24x128xbf16>, vector<128x128xbf16>, vector<24x128xf32> -> vector<24x128xf32>
    %116 = arith.addf %111, %115 : vector<24x128xf32>
    %cst_110 = arith.constant 0.000000e+00 : f32
    %117 = vector.broadcast %cst_110 : f32 to vector<24x128xf32>
    %118 = arith.maximumf %116, %117 : vector<24x128xf32>
    %119 = arith.truncf %118 : vector<24x128xf32> to vector<24x128xbf16>
    %c0_111 = arith.constant 0 : index
    %c0_112 = arith.constant 0 : index
    %c0_113 = arith.constant 0 : index
    %120 = vector.load %arg9[%c0_111, %c0_112, %c0_113] : memref<2x128x128xbf16, #tpu.memory_space<vmem>>, vector<1x128x128xbf16>
    %121 = vector.shape_cast %120 : vector<1x128x128xbf16> to vector<128x128xbf16>
    %cst_114 = arith.constant dense<0.000000e+00> : vector<24x128xf32>
    %122 = tpu.matmul %119, %121, %cst_114 {dimension_numbers = #tpu.dot_dimension_numbers<[1], [0], [0], [1], [0, 0, 1, 1], [], []>} : vector<24x128xbf16>, vector<128x128xbf16>, vector<24x128xf32> -> vector<24x128xf32>
    %c7_115 = arith.constant 7 : index
    %c0_116 = arith.constant 0 : index
    %123 = vector.load %arg12[%c7_115, %c0_116] : memref<38x128xf32, #tpu.memory_space<vmem>>, vector<24x128xf32>
    %124 = arith.addf %123, %122 : vector<24x128xf32>
    %c0_117 = arith.constant 0 : index
    %c0_118 = arith.constant 0 : index
    %125 = vector.load %arg7[%c0_117, %c0_118] : memref<24x1xf32, #tpu.memory_space<vmem>>, vector<24x1xf32>
    %126 = vector.broadcast %125 : vector<24x1xf32> to vector<24x128xf32>
    %127 = arith.mulf %124, %126 : vector<24x128xf32>
    %c7_119 = arith.constant 7 : index
    %c0_120 = arith.constant 0 : index
    %128 = vector.load %arg12[%c7_119, %c0_120] : memref<38x128xf32, #tpu.memory_space<vmem>>, vector<24x128xf32>
    tpu.vector_store %arg12[%c7_119, %c0_120], %127 {strides = array<i32>} : memref<38x128xf32, #tpu.memory_space<vmem>>, vector<24x128xf32>,
    %c0_121 = arith.constant 0 : index
    %c0_122 = arith.constant 0 : index
    %129 = vector.load %arg12[%c0_121, %c0_122] : memref<38x128xf32, #tpu.memory_space<vmem>>, vector<38x128xf32>
    %cst_123 = arith.constant 0.000000e+00 : f32
    %130 = vector.broadcast %cst_123 : f32 to vector<38x128xf32>
    %131 = arith.maximumf %129, %130 : vector<38x128xf32>
    %132 = arith.truncf %131 : vector<38x128xf32> to vector<38x128xbf16>
    %133 = vector.extract_strided_slice %132 {offsets = [0, 0], sizes = [24, 128], strides = [1, 1]} : vector<38x128xbf16> to vector<24x128xbf16>
    %c1_124 = arith.constant 1 : index
    %c0_125 = arith.constant 0 : index
    %c0_126 = arith.constant 0 : index
    %c0_127 = arith.constant 0 : index
    %134 = vector.load %arg8[%c1_124, %c0_125, %c0_126, %c0_127] : memref<2x9x128x128xbf16, #tpu.memory_space<vmem>>, vector<1x1x128x128xbf16>
    %135 = vector.shape_cast %134 : vector<1x1x128x128xbf16> to vector<128x128xbf16>
    %cst_128 = arith.constant dense<0.000000e+00> : vector<24x128xf32>
    %136 = tpu.matmul %133, %135, %cst_128 {dimension_numbers = #tpu.dot_dimension_numbers<[1], [0], [0], [1], [0, 0, 1, 1], [], []>} : vector<24x128xbf16>, vector<128x128xbf16>, vector<24x128xf32> -> vector<24x128xf32>
    %137 = vector.extract_strided_slice %132 {offsets = [1, 0], sizes = [24, 128], strides = [1, 1]} : vector<38x128xbf16> to vector<24x128xbf16>
    %c1_129 = arith.constant 1 : index
    %c1_130 = arith.constant 1 : index
    %c0_131 = arith.constant 0 : index
    %c0_132 = arith.constant 0 : index
    %138 = vector.load %arg8[%c1_129, %c1_130, %c0_131, %c0_132] : memref<2x9x128x128xbf16, #tpu.memory_space<vmem>>, vector<1x1x128x128xbf16>
    %139 = vector.shape_cast %138 : vector<1x1x128x128xbf16> to vector<128x128xbf16>
    %cst_133 = arith.constant dense<0.000000e+00> : vector<24x128xf32>
    %140 = tpu.matmul %137, %139, %cst_133 {dimension_numbers = #tpu.dot_dimension_numbers<[1], [0], [0], [1], [0, 0, 1, 1], [], []>} : vector<24x128xbf16>, vector<128x128xbf16>, vector<24x128xf32> -> vector<24x128xf32>
    %141 = arith.addf %136, %140 : vector<24x128xf32>
    %142 = vector.extract_strided_slice %132 {offsets = [2, 0], sizes = [24, 128], strides = [1, 1]} : vector<38x128xbf16> to vector<24x128xbf16>
    %c1_134 = arith.constant 1 : index
    %c2_135 = arith.constant 2 : index
    %c0_136 = arith.constant 0 : index
    %c0_137 = arith.constant 0 : index
    %143 = vector.load %arg8[%c1_134, %c2_135, %c0_136, %c0_137] : memref<2x9x128x128xbf16, #tpu.memory_space<vmem>>, vector<1x1x128x128xbf16>
    %144 = vector.shape_cast %143 : vector<1x1x128x128xbf16> to vector<128x128xbf16>
    %cst_138 = arith.constant dense<0.000000e+00> : vector<24x128xf32>
    %145 = tpu.matmul %142, %144, %cst_138 {dimension_numbers = #tpu.dot_dimension_numbers<[1], [0], [0], [1], [0, 0, 1, 1], [], []>} : vector<24x128xbf16>, vector<128x128xbf16>, vector<24x128xf32> -> vector<24x128xf32>
    %146 = arith.addf %141, %145 : vector<24x128xf32>
    %147 = vector.extract_strided_slice %132 {offsets = [6, 0], sizes = [24, 128], strides = [1, 1]} : vector<38x128xbf16> to vector<24x128xbf16>
    %c1_139 = arith.constant 1 : index
    %c3_140 = arith.constant 3 : index
    %c0_141 = arith.constant 0 : index
    %c0_142 = arith.constant 0 : index
    %148 = vector.load %arg8[%c1_139, %c3_140, %c0_141, %c0_142] : memref<2x9x128x128xbf16, #tpu.memory_space<vmem>>, vector<1x1x128x128xbf16>
    %149 = vector.shape_cast %148 : vector<1x1x128x128xbf16> to vector<128x128xbf16>
    %cst_143 = arith.constant dense<0.000000e+00> : vector<24x128xf32>
    %150 = tpu.matmul %147, %149, %cst_143 {dimension_numbers = #tpu.dot_dimension_numbers<[1], [0], [0], [1], [0, 0, 1, 1], [], []>} : vector<24x128xbf16>, vector<128x128xbf16>, vector<24x128xf32> -> vector<24x128xf32>
    %151 = arith.addf %146, %150 : vector<24x128xf32>
    %152 = vector.extract_strided_slice %132 {offsets = [7, 0], sizes = [24, 128], strides = [1, 1]} : vector<38x128xbf16> to vector<24x128xbf16>
    %c1_144 = arith.constant 1 : index
    %c4_145 = arith.constant 4 : index
    %c0_146 = arith.constant 0 : index
    %c0_147 = arith.constant 0 : index
    %153 = vector.load %arg8[%c1_144, %c4_145, %c0_146, %c0_147] : memref<2x9x128x128xbf16, #tpu.memory_space<vmem>>, vector<1x1x128x128xbf16>
    %154 = vector.shape_cast %153 : vector<1x1x128x128xbf16> to vector<128x128xbf16>
    %cst_148 = arith.constant dense<0.000000e+00> : vector<24x128xf32>
    %155 = tpu.matmul %152, %154, %cst_148 {dimension_numbers = #tpu.dot_dimension_numbers<[1], [0], [0], [1], [0, 0, 1, 1], [], []>} : vector<24x128xbf16>, vector<128x128xbf16>, vector<24x128xf32> -> vector<24x128xf32>
    %156 = arith.addf %151, %155 : vector<24x128xf32>
    %157 = vector.extract_strided_slice %132 {offsets = [8, 0], sizes = [24, 128], strides = [1, 1]} : vector<38x128xbf16> to vector<24x128xbf16>
    %c1_149 = arith.constant 1 : index
    %c5_150 = arith.constant 5 : index
    %c0_151 = arith.constant 0 : index
    %c0_152 = arith.constant 0 : index
    %158 = vector.load %arg8[%c1_149, %c5_150, %c0_151, %c0_152] : memref<2x9x128x128xbf16, #tpu.memory_space<vmem>>, vector<1x1x128x128xbf16>
    %159 = vector.shape_cast %158 : vector<1x1x128x128xbf16> to vector<128x128xbf16>
    %cst_153 = arith.constant dense<0.000000e+00> : vector<24x128xf32>
    %160 = tpu.matmul %157, %159, %cst_153 {dimension_numbers = #tpu.dot_dimension_numbers<[1], [0], [0], [1], [0, 0, 1, 1], [], []>} : vector<24x128xbf16>, vector<128x128xbf16>, vector<24x128xf32> -> vector<24x128xf32>
    %161 = arith.addf %156, %160 : vector<24x128xf32>
    %162 = vector.extract_strided_slice %132 {offsets = [12, 0], sizes = [24, 128], strides = [1, 1]} : vector<38x128xbf16> to vector<24x128xbf16>
    %c1_154 = arith.constant 1 : index
    %c6_155 = arith.constant 6 : index
    %c0_156 = arith.constant 0 : index
    %c0_157 = arith.constant 0 : index
    %163 = vector.load %arg8[%c1_154, %c6_155, %c0_156, %c0_157] : memref<2x9x128x128xbf16, #tpu.memory_space<vmem>>, vector<1x1x128x128xbf16>
    %164 = vector.shape_cast %163 : vector<1x1x128x128xbf16> to vector<128x128xbf16>
    %cst_158 = arith.constant dense<0.000000e+00> : vector<24x128xf32>
    %165 = tpu.matmul %162, %164, %cst_158 {dimension_numbers = #tpu.dot_dimension_numbers<[1], [0], [0], [1], [0, 0, 1, 1], [], []>} : vector<24x128xbf16>, vector<128x128xbf16>, vector<24x128xf32> -> vector<24x128xf32>
    %166 = arith.addf %161, %165 : vector<24x128xf32>
    %167 = vector.extract_strided_slice %132 {offsets = [13, 0], sizes = [24, 128], strides = [1, 1]} : vector<38x128xbf16> to vector<24x128xbf16>
    %c1_159 = arith.constant 1 : index
    %c7_160 = arith.constant 7 : index
    %c0_161 = arith.constant 0 : index
    %c0_162 = arith.constant 0 : index
    %168 = vector.load %arg8[%c1_159, %c7_160, %c0_161, %c0_162] : memref<2x9x128x128xbf16, #tpu.memory_space<vmem>>, vector<1x1x128x128xbf16>
    %169 = vector.shape_cast %168 : vector<1x1x128x128xbf16> to vector<128x128xbf16>
    %cst_163 = arith.constant dense<0.000000e+00> : vector<24x128xf32>
    %170 = tpu.matmul %167, %169, %cst_163 {dimension_numbers = #tpu.dot_dimension_numbers<[1], [0], [0], [1], [0, 0, 1, 1], [], []>} : vector<24x128xbf16>, vector<128x128xbf16>, vector<24x128xf32> -> vector<24x128xf32>
    %171 = arith.addf %166, %170 : vector<24x128xf32>
    %172 = vector.extract_strided_slice %132 {offsets = [14, 0], sizes = [24, 128], strides = [1, 1]} : vector<38x128xbf16> to vector<24x128xbf16>
    %c1_164 = arith.constant 1 : index
    %c8_165 = arith.constant 8 : index
    %c0_166 = arith.constant 0 : index
    %c0_167 = arith.constant 0 : index
    %173 = vector.load %arg8[%c1_164, %c8_165, %c0_166, %c0_167] : memref<2x9x128x128xbf16, #tpu.memory_space<vmem>>, vector<1x1x128x128xbf16>
    %174 = vector.shape_cast %173 : vector<1x1x128x128xbf16> to vector<128x128xbf16>
    %cst_168 = arith.constant dense<0.000000e+00> : vector<24x128xf32>
    %175 = tpu.matmul %172, %174, %cst_168 {dimension_numbers = #tpu.dot_dimension_numbers<[1], [0], [0], [1], [0, 0, 1, 1], [], []>} : vector<24x128xbf16>, vector<128x128xbf16>, vector<24x128xf32> -> vector<24x128xf32>
    %176 = arith.addf %171, %175 : vector<24x128xf32>
    %cst_169 = arith.constant 0.000000e+00 : f32
    %177 = vector.broadcast %cst_169 : f32 to vector<24x128xf32>
    %178 = arith.maximumf %176, %177 : vector<24x128xf32>
    %179 = arith.truncf %178 : vector<24x128xf32> to vector<24x128xbf16>
    %c1_170 = arith.constant 1 : index
    %c0_171 = arith.constant 0 : index
    %c0_172 = arith.constant 0 : index
    %180 = vector.load %arg9[%c1_170, %c0_171, %c0_172] : memref<2x128x128xbf16, #tpu.memory_space<vmem>>, vector<1x128x128xbf16>
    %181 = vector.shape_cast %180 : vector<1x128x128xbf16> to vector<128x128xbf16>
    %cst_173 = arith.constant dense<0.000000e+00> : vector<24x128xf32>
    %182 = tpu.matmul %179, %181, %cst_173 {dimension_numbers = #tpu.dot_dimension_numbers<[1], [0], [0], [1], [0, 0, 1, 1], [], []>} : vector<24x128xbf16>, vector<128x128xbf16>, vector<24x128xf32> -> vector<24x128xf32>
    %c7_174 = arith.constant 7 : index
    %c0_175 = arith.constant 0 : index
    %183 = vector.load %arg12[%c7_174, %c0_175] : memref<38x128xf32, #tpu.memory_space<vmem>>, vector<24x128xf32>
    %184 = arith.addf %183, %182 : vector<24x128xf32>
    %c0_176 = arith.constant 0 : index
    %c0_177 = arith.constant 0 : index
    %185 = vector.load %arg7[%c0_176, %c0_177] : memref<24x1xf32, #tpu.memory_space<vmem>>, vector<24x1xf32>
    %186 = vector.broadcast %185 : vector<24x1xf32> to vector<24x128xf32>
    %187 = arith.mulf %184, %186 : vector<24x128xf32>
    %c7_178 = arith.constant 7 : index
    %c0_179 = arith.constant 0 : index
    %188 = vector.load %arg12[%c7_178, %c0_179] : memref<38x128xf32, #tpu.memory_space<vmem>>, vector<24x128xf32>
    tpu.vector_store %arg12[%c7_178, %c0_179], %187 {strides = array<i32>} : memref<38x128xf32, #tpu.memory_space<vmem>>, vector<24x128xf32>,
    %c7_180 = arith.constant 7 : index
    %c0_181 = arith.constant 0 : index
    %189 = vector.load %arg12[%c7_180, %c0_181] : memref<38x128xf32, #tpu.memory_space<vmem>>, vector<24x128xf32>
    %cst_182 = arith.constant 0.000000e+00 : f32
    %190 = vector.broadcast %cst_182 : f32 to vector<24x128xf32>
    %191 = arith.maximumf %189, %190 : vector<24x128xf32>
    %c0_183 = arith.constant 0 : index
    %c0_184 = arith.constant 0 : index
    %c0_185 = arith.constant 0 : index
    %192 = vector.load %arg10[%c0_183, %c0_184, %c0_185] : memref<1x24x128xf32, #tpu.memory_space<vmem>>, vector<1x24x128xf32>
    %193 = vector.shape_cast %192 : vector<1x24x128xf32> to vector<24x128xf32>
    %194 = vector.shape_cast %191 : vector<24x128xf32> to vector<1x24x128xf32>
    tpu.vector_store %arg10[%c0_183, %c0_184, %c0_185], %194 {strides = array<i32>} : memref<1x24x128xf32, #tpu.memory_space<vmem>>, vector<1x24x128xf32>,
    return
  }
  func.func @transform_0(%arg0: i32) -> (i32, i32, i32) {
    %c0_i32 = arith.constant 0 : i32
    %c0_i32_0 = arith.constant 0 : i32
    %c0_i32_1 = arith.constant 0 : i32
    return %arg0, %c0_i32, %c0_i32_0 : i32, i32, i32
  }
  func.func @transform_1(%arg0: i32) -> (i32, i32) {
    %c0_i32 = arith.constant 0 : i32
    %c0_i32_0 = arith.constant 0 : i32
    %c0_i32_1 = arith.constant 0 : i32
    return %c0_i32, %c0_i32_0 : i32, i32
  }
  func.func @transform_2(%arg0: i32) -> (i32, i32) {
    %c0_i32 = arith.constant 0 : i32
    %c0_i32_0 = arith.constant 0 : i32
    %c0_i32_1 = arith.constant 0 : i32
    return %c0_i32, %c0_i32_0 : i32, i32
  }
  func.func @transform_3(%arg0: i32) -> (i32, i32) {
    %c0_i32 = arith.constant 0 : i32
    %c0_i32_0 = arith.constant 0 : i32
    %c0_i32_1 = arith.constant 0 : i32
    return %c0_i32, %c0_i32_0 : i32, i32
  }
  func.func @transform_4(%arg0: i32) -> (i32, i32, i32) {
    %c0_i32 = arith.constant 0 : i32
    %c0_i32_0 = arith.constant 0 : i32
    %c0_i32_1 = arith.constant 0 : i32
    %c0_i32_2 = arith.constant 0 : i32
    return %c0_i32, %c0_i32_0, %c0_i32_1 : i32, i32, i32
  }
  func.func @transform_5(%arg0: i32) -> (i32, i32) {
    %c0_i32 = arith.constant 0 : i32
    %c0_i32_0 = arith.constant 0 : i32
    %c0_i32_1 = arith.constant 0 : i32
    return %c0_i32, %c0_i32_0 : i32, i32
  }
  func.func @transform_6(%arg0: i32) -> (i32, i32) {
    %c0_i32 = arith.constant 0 : i32
    %c0_i32_0 = arith.constant 0 : i32
    %c0_i32_1 = arith.constant 0 : i32
    return %c0_i32, %c0_i32_0 : i32, i32
  }
  func.func @transform_7(%arg0: i32) -> (i32, i32, i32, i32) {
    %c0_i32 = arith.constant 0 : i32
    %c0_i32_0 = arith.constant 0 : i32
    %c0_i32_1 = arith.constant 0 : i32
    %c0_i32_2 = arith.constant 0 : i32
    %c0_i32_3 = arith.constant 0 : i32
    return %c0_i32, %c0_i32_0, %c0_i32_1, %c0_i32_2 : i32, i32, i32, i32
  }
  func.func @transform_8(%arg0: i32) -> (i32, i32, i32) {
    %c0_i32 = arith.constant 0 : i32
    %c0_i32_0 = arith.constant 0 : i32
    %c0_i32_1 = arith.constant 0 : i32
    %c0_i32_2 = arith.constant 0 : i32
    return %c0_i32, %c0_i32_0, %c0_i32_1 : i32, i32, i32
  }
  func.func @transform_9(%arg0: i32) -> (i32, i32, i32) {
    %c0_i32 = arith.constant 0 : i32
    %c0_i32_0 = arith.constant 0 : i32
    %c0_i32_1 = arith.constant 0 : i32
    return %arg0, %c0_i32, %c0_i32_0 : i32, i32, i32
  }
}

</mosaic_0001>

<bundles_post_ra>
// kernel: feature_encoder_forward.1
= control target key start
LH: loop header
LB: loop body
LE: loop exit
PB: predicated region body
PF: predicated region fallthrough
CT: control target
= control target key end

     0   :  { %s6656_s30 = smov 0   ;;  %s7729_s0 = inlined_call_operand.vmem [shape: bf16[2,120,128], index: 0, kind: input, shape index: {}]   ;;  %s7730_s1 = inlined_call_operand.vmem [shape: f32[120,1], index: 1, kind: input, shape index: {}]   ;;  %s7731_s2 = inlined_call_operand.vmem [shape: bf16[128,128], index: 2, kind: input, shape index: {}]   ;;  %s7732_s3 = inlined_call_operand.vmem [shape: f32[1,128], index: 3, kind: input, shape index: {}]   ;;  %s7733_s4 = inlined_call_operand.vmem [shape: bf16[9,128,128], index: 4, kind: input, shape index: {}]   ;;  %s7734_s5 = inlined_call_operand.vmem [shape: f32[1,128], index: 5, kind: input, shape index: {}]   ;;  %s7735_s6 = inlined_call_operand.vmem [shape: f32[24,1], index: 6, kind: input, shape index: {}]   ;;  %s7736_s7 = inlined_call_operand.vmem [shape: bf16[2,9,128,128], index: 7, kind: input, shape index: {}]   ;;  %s7737_s8 = inlined_call_operand.vmem [shape: bf16[2,128,128], index: 8, kind: input, shape index: {}]   ;;  %s7738_s9 = inlined_call_operand.vmem [shape: f32[2,24,128], index: 9, kind: output, shape index: {}]  }
   0x1 LB: > { %s4638_s10 = sadd.s32 4294967295, %s6602_s30   ;;  %p4642_p0 = scmp.ge.s32.totalorder %s6602_s30, 1  ;;  %s6602_s30 = sphi %s6656_s30, %s19_s30  }
   0x2   : > { %p287_p1 = scmp.lt.s32.totalorder %s6602_s30, 3 }
   0x4   : > { %p288_p2 = pnand %p4642_p0, %p287_p1 }
   0x5   : > { %p323_p3 = scmp.lt.s32.totalorder (!%p288_p2), %s4638_s10, 1 }
   0x6   : > { %291 = sbr.rel (%p288_p2) target bundleno = 1723 (0x6bb), region = 56 }
   0xb   : > { %v6332_v0 = vld [vmem:[%s7731_s2 + $0x38] sm:$0xff]   ;;  %v6333_v1 = vld [vmem:[%s7731_s2 + $0x30] sm:$0xff]   ;;  %s7740_s10 = smov (!%p323_p3, %s4638_s10), 1  ;;  %v6604_v2 = vmov 0   ;;  %v6334_v3 = vld [vmem:[%s7731_s2 + $0x28] sm:$0xff]   ;;  %vm808_vm0 = vcmask 1044480  }
   0xc   : > { %5706 = vmatprep.subr.bf16.mxu0 %v6332_v0  ;;  %6331 = vset.pattern.permute.xlu1 %v6604_v2  ;;  %s6318_s17 = smul.u32 60, %s7740_s10  ;;  %v6335_v4 = vld [vmem:[%s7731_s2 + $0x20] sm:$0xff]   ;;  %v6336_v6 = vld [vmem:[%s7731_s2 + $0x18] sm:$0xff]   ;;  %v6337_v8 = vld [vmem:[%s7731_s2 + $0x10] sm:$0xff]   ;;  %vm1047_vm1 = vsmask.f32 7424 }
   0xd   : > { %5707 = vmatpush3.bf16.msra.mxu0 %v6332_v0  ;;  %6330 = vset.pattern.permute.xlu0 %v6604_v2  ;;  %v581_v7 = vld [vmem:[%s7730_s1 + $0x20] sm:$0xff]  ;;  %v579_v9 = vld [vmem:[%s7730_s1 + $0x10] sm:$0xff]  ;;  %v582_v10 = vld [vmem:[%s7730_s1 + $0x28] sm:$0xff]  ;;  %vm1861_vm2 = vsmask.f32 4352  ;;  %vm1195_vm3 = vcmask 1045504  }
   0xe   : > { %5708 = vmatprep.subr.bf16.mxu0 %v6333_v1  ;;  %s6679_s20 = scalar_lea.vmem %s7729_s0, %s6318_s17  ;;  %614 = vperm.xlu1 %6331, %v581_v7   ;;  %v580_v11 = vld [vmem:[%s7730_s1 + $0x18] sm:$0xff]  ;;  %v6338_v12 = vld [vmem:[%s7731_s2 + $0x8] sm:$0xff]   ;;  %v583_v14 = vld [vmem:[%s7730_s1 + $0x30] sm:$0xff]  ;;  %vm1457_vm4 = vsmask.f32 5376  ;;  %vm1331_vm5 = vcmask 1046528  }
   0xf   : > { %v6340_v5 = vld [vmem:[%s6679_s20] sm:$0xff]   ;;  %604 = vperm.xlu0 %6330, %v579_v9   ;;  %v584_v13 = vld [vmem:[%s7730_s1 + $0x38] sm:$0xff]  ;;  %v578_v16 = vld [vmem:[%s7730_s1 + $0x8] sm:$0xff]  ;;  %vm2786_vm6 = vcmask 1041408   ;;  %vm3045_vm7 = vcmask 1040384   ;;  %vm2663_vm8 = vcmask 1043456  }
  0x10   : > { %5722 = vmatprep.mubr.bf16.mxu0 %v6340_v5  ;;  %v6339_v15 = vld [vmem:[%s7731_s2] sm:$0xff]   ;;  %v586_v18 = vld [vmem:[%s7730_s1 + $0x48] sm:$0xff]  ;;  %v6342_v21 = vld [vmem:[%s6679_s20 + $0x10] sm:$0xff]   ;;  %vm2910_vm9 = vsmask.f32 1280  ;;  %s6319_s24 = smul.u32 24, %s7740_s10 }
  0x11   : > { %5709 = vmatpush3.bf16.msra.mxu0 %v6333_v1  ;;  %v577_v17 = vld [vmem:[%s7730_s1] sm:$0xff]  ;;  %v6341_v19 = vld [vmem:[%s6679_s20 + $0x8] sm:$0xff]   ;;  %v588_v22 = vld [vmem:[%s7730_s1 + $0x58] sm:$0xff] }
  0x12   : > { %5710 = vmatprep.subr.bf16.mxu0 %v6334_v3  ;;  %619 = vperm.xlu1 %6331, %v582_v10   ;;  %v585_v20 = vld [vmem:[%s7730_s1 + $0x40] sm:$0xff]  ;;  %v587_v23 = vld [vmem:[%s7730_s1 + $0x50] sm:$0xff]  ;;  %v590_v24 = vld [vmem:[%s7730_s1 + $0x68] sm:$0xff]  ;;  %s332_s27 = scalar_lea.vmem %s7738_s9, %s6319_s24 }
  0x13   : > { %609 = vperm.xlu0 %6330, %v580_v11   ;;  %v6343_v25 = vld [vmem:[%s6679_s20 + $0x18] sm:$0xff]   ;;  %v589_v26 = vld [vmem:[%s7730_s1 + $0x60] sm:$0xff]  ;;  %v591_v30 = vld [vmem:[%s7730_s1 + $0x70] sm:$0xff] }
  0x14   : > { %v6348_v27 = vld [vmem:[%s7733_s4 + $0x38] sm:$0xff]   ;;  %v6344_v28 = vld [vmem:[%s6679_s20 + $0x20] sm:$0xff]   ;;  %v6349_v31 = vld [vmem:[%s7733_s4 + $0x30] sm:$0xff]  }
  0x15   : > { %5711 = vmatpush3.bf16.msra.mxu0 %v6334_v3  ;;  %v1993_v29 = vld [vmem:[%s7735_s6] sm:$0xff]  ;;  %v1995_v32 = vld [vmem:[%s7735_s6 + $0x10] sm:$0xff]  ;;  %v6345_v33 = vld [vmem:[%s6679_s20 + $0x28] sm:$0xff]  }
  0x16   : > { %5712 = vmatprep.subr.bf16.mxu0 %v6335_v4  ;;  %629 = vperm.xlu1 %6331, %v584_v13   ;;  %v1994_v34 = vld [vmem:[%s7735_s6 + $0x8] sm:$0xff]  ;;  %v6346_v35 = vld [vmem:[%s6679_s20 + $0x30] sm:$0xff]   ;;  %v6347_v36 = vld [vmem:[%s6679_s20 + $0x38] ss:$0 sps:$4 sm:$0xff]  }
  0x17   : > { %624 = vperm.xlu0 %6330, %v583_v14   ;;  %v6350_v37 = vld [vmem:[%s7733_s4 + $0x28] sm:$0xff]   ;;  %v6351_v38 = vld [vmem:[%s7733_s4 + $0x78] sm:$0xff]   ;;  %v6352_v39 = vld [vmem:[%s7733_s4 + $0x20] sm:$0xff]  }
  0x18   : > { %5738 = vmatprep.subr.bf16.mxu1 %v6351_v38  ;;  %v6353_v40 = vld [vmem:[%s7733_s4 + $0x70] sm:$0xff]   ;;  %v6354_v41 = vld [vmem:[%s7733_s4 + $0x18] sm:$0xff]   ;;  %v6355_v42 = vld [vmem:[%s7733_s4 + $0x68] sm:$0xff]  }
  0x19   : > { %5713 = vmatpush3.bf16.msra.mxu0 %v6335_v4  ;;  %5739 = vmatpush3.bf16.msra.mxu1 %v6351_v38  ;;  %v6356_v43 = vld [vmem:[%s7733_s4 + $0x10] sm:$0xff]   ;;  %v6357_v44 = vld [vmem:[%s7733_s4 + $0x60] sm:$0xff]   ;;  %v6358_v45 = vld [vmem:[%s7733_s4 + $0x8] sm:$0xff]  }
  0x1a   : > { %5714 = vmatprep.subr.bf16.mxu0 %v6336_v6  ;;  %599 = vperm.xlu1 %6331, %v578_v16   ;;  %v6359_v46 = vld [vmem:[%s7733_s4 + $0x58] sm:$0xff]   ;;  %v6360_v47 = vld [vmem:[%s7733_s4] sm:$0xff]   ;;  %v6361_v48 = vld [vmem:[%s7733_s4 + $0x50] sm:$0xff]  }
  0x1b   : > { %594 = vperm.xlu0 %6330, %v577_v17   ;;  %5740 = vmatprep.subr.bf16.mxu1 %v6353_v40  ;;  %v6803_v49 = vld [vmem:[%s7733_s4 + $0xf8] sm:$0xff]   ;;  %v6365_v50 = vld [vmem:[%s7733_s4 + $0x48] sm:$0xff]   ;;  %v6367_v51 = vld [vmem:[%s7733_s4 + $0x40] sm:$0xff]  }
  0x1c   : > { %v6815_v52 = vld [vmem:[%s7733_s4 + $0xb8] sm:$0xff]   ;;  %v6821_v58 = vld [vmem:[%s7732_s3] ss:$0 sm:$0xff] }
  0x1d   : > { %5715 = vmatpush3.bf16.msra.mxu0 %v6336_v6  ;;  %5741 = vmatpush3.bf16.msra.mxu1 %v6353_v40 }
  0x1e   : > { %5716 = vmatprep.subr.bf16.mxu0 %v6337_v8  ;;  %639 = vperm.xlu1 %6331, %v586_v18  }
  0x1f   : > { %634 = vperm.xlu0 %6330, %v585_v20   ;;  %5742 = vmatprep.subr.bf16.mxu1 %v6355_v42 }
  0x21   : > { %5717 = vmatpush3.bf16.msra.mxu0 %v6337_v8  ;;  %5743 = vmatpush3.bf16.msra.mxu1 %v6355_v42 }
  0x22   : > { %5718 = vmatprep.subr.bf16.mxu0 %v6338_v12  ;;  %649 = vperm.xlu1 %6331, %v588_v22  }
  0x23   : > { %644 = vperm.xlu0 %6330, %v587_v23   ;;  %5744 = vmatprep.subr.bf16.mxu1 %v6357_v44 }
  0x25   : > { %5719 = vmatpush3.bf16.msra.mxu0 %v6338_v12  ;;  %5745 = vmatpush3.bf16.msra.mxu1 %v6357_v44 }
  0x26   : > { %5720 = vmatprep.subr.bf16.mxu0 %v6339_v15  ;;  %659 = vperm.xlu1 %6331, %v590_v24  }
  0x27   : > { %654 = vperm.xlu0 %6330, %v589_v26   ;;  %5746 = vmatprep.subr.bf16.mxu1 %v6359_v46 }
  0x29   : > { %5721 = vmatpush3.bf16.msra.mxu0 %v6339_v15  ;;  %5747 = vmatpush3.bf16.msra.mxu1 %v6359_v46 }
  0x2a   : > { %5758 = vmatprep.subr.bf16.mxu0 %v6348_v27  ;;  %1998 = vperm.xlu1 %6331, %v1993_v29  }
  0x2b   : > { %664 = vperm.xlu0 %6330, %v591_v30   ;;  %5748 = vmatprep.subr.bf16.mxu1 %v6361_v48 }
  0x2c   : > { %5723 = vmatmul.mubr.bf16.vlgmr.msra.gmra.mxu0 %v6341_v19 }
  0x2d   : > { %5726 = vmatprep.mubr.bf16.mxu0 %v6342_v21  ;;  %5759 = vmatpush3.bf16.msra.mxu0 %v6348_v27 }
  0x2e   : > { %5760 = vmatprep.subr.bf16.mxu0 %v6349_v31  ;;  %2008 = vperm.xlu1 %6331, %v1995_v32  }
  0x2f   : > { %2003 = vperm.xlu0 %6330, %v1994_v34   ;;  %5749 = vmatpush3.bf16.msra.mxu1 %v6361_v48 }
  0x30   : > { %5750 = vmatprep.subr.bf16.mxu1 %v6365_v50 }
  0x31   : > { %5761 = vmatpush3.bf16.msra.mxu0 %v6349_v31 }
  0x32   : > { %3285 = vperm.xlu1 %6331, %v1994_v34   ;;  %5762 = vmatprep.subr.bf16.mxu0 %v6350_v37 }
  0x33   : > { %3280 = vperm.xlu0 %6330, %v1993_v29   ;;  %5751 = vmatpush3.bf16.msra.mxu1 %v6365_v50 }
  0x34   : > { %5727 = vmatmul.mubr.bf16.gmra.mxu0 %v6343_v25  ;;  %5752 = vmatprep.subr.bf16.mxu1 %v6367_v51 }
  0x35   : > { %5730 = vmatprep.mubr.bf16.mxu0 %v6344_v28  ;;  %5763 = vmatpush3.bf16.msra.mxu0 %v6350_v37 }
  0x36   : > { %4555 = vperm.xlu1 %6331, %v1993_v29   ;;  %5764 = vmatprep.subr.bf16.mxu0 %v6352_v39 }
  0x37   : > { %3290 = vperm.xlu0 %6330, %v1995_v32   ;;  %5753 = vmatpush3.bf16.msra.mxu1 %v6367_v51 }
  0x38   : > { %5778 = vmatprep.subr.bf16.mxu1 %v6815_v52 }
  0x39   : > { %5765 = vmatpush3.bf16.msra.mxu0 %v6352_v39 }
  0x3a   : > { %4565 = vperm.xlu1 %6331, %v1995_v32   ;;  %5766 = vmatprep.subr.bf16.mxu0 %v6354_v41 }
  0x3b   : > { %4560 = vperm.xlu0 %6330, %v1994_v34  }
  0x3c   : > { %5731 = vmatmul.mubr.bf16.gmra.mxu0 %v6345_v33 }
  0x3d   : > { %5734 = vmatprep.mubr.bf16.mxu0 %v6346_v35  ;;  %5767 = vmatpush3.bf16.msra.mxu0 %v6354_v41 }
  0x3e   : > { %5768 = vmatprep.subr.bf16.mxu0 %v6356_v43 }
  0x41   : > { %5769 = vmatpush3.bf16.msra.mxu0 %v6356_v43 }
  0x42   : > { %5770 = vmatprep.subr.bf16.mxu0 %v6358_v45 }
  0x44   : > { %5735 = vmatmul.mubr.bf16.gmra.mxu0 %v6347_v36 }
  0x45   : > { %5771 = vmatpush3.bf16.msra.mxu0 %v6358_v45 }
  0x46   : > { %5772 = vmatprep.subr.bf16.mxu0 %v6360_v47 }
  0x49   : > { %5773 = vmatpush3.bf16.msra.mxu0 %v6360_v47 }
  0x4a   : > { %5798 = vmatprep.subr.bf16.mxu0 %v6803_v49 }
  0x89   : > { %v615_v54 = vpop.permute.xlu1 %614 }
  0x8a   : > { %v605_v53 = vpop.permute.xlu0 %604 }
  0x8d   : > { %v620_v56 = vpop.permute.xlu1 %619 }
  0x8e   : > { %v610_v55 = vpop.permute.xlu0 %609 }
  0x91   : > { %v630_v62 = vpop.permute.xlu1 %629 }
  0x92   : > { %v625_v57 = vpop.permute.xlu0 %624 }
  0x95   : > { %v600_v9 = vpop.permute.xlu1 %599 }
  0x96   : > { %v595_v0 = vpop.permute.xlu0 %594 }
  0x99   : > { %v640_v34 = vpop.permute.xlu1 %639 }
  0x9a   : > { %v635_v14 = vpop.permute.xlu0 %634 }
  0x9e   : > { %v645_v28 = vpop.permute.xlu0 %644 }
  0xa2   : > { %v6834_v48 = vpop.permute.xlu0 %654 }
  0xec   : > { %v5724_v59 = vpop.f32.mrf.mxu0 }
  0xed   : > { %v509_v60 = vadd.f32 %v5724_v59, %v6821_v58 }
  0xee   : > { %v500_v61 = vpop.f32.mrf.mxu0 }
  0xef   : > { %v501_v63 = vadd.f32 %v6821_v58, %v500_v61  ;;  %v564_v2 = vmax.f32 %v509_v60, 0.0  ;;  %v650_v60 = vpop.permute.xlu1 %649 }
  0xf0   : > { %v5725_v1 = vpop.f32.mrf.mxu0 }
  0xf1   : > { %v512_v3 = vadd.f32 %v5725_v1, %v6821_v58  ;;  %v562_v5 = vmax.f32 %v501_v63, 0.0  ;;  %v669_v10 = vmul.f32 %v605_v53, %v564_v2 }
  0xf2   : > { %v503_v4 = vpop.f32.mrf.mxu0 }
  0xf3   : > { %v565_v6 = vmax.f32 %v512_v3, 0.0  ;;  %v504_v7 = vadd.f32 %v6821_v58, %v503_v4  ;;  %v667_v16 = vmul.f32 %v595_v0, %v562_v5 }
  0xf4   : > { %v5728_v8 = vpop.f32.mrf.mxu0 }
  0xf5   : > { %v670_v11 = vmul.f32 %v610_v55, %v565_v6  ;;  %v563_v12 = vmax.f32 %v504_v7, 0.0  ;;  %v525_v13 = vadd.f32 %v5728_v8, %v6821_v58 }
  0xf6   : > { %v516_v15 = vpop.f32.mrf.mxu0 }
  0xf7   : > { %v5367_v17 = vpack.c.bf16 %v670_v11, %v669_v10  ;;  %v668_v18 = vmul.f32 %v600_v9, %v563_v12  ;;  %v517_v19 = vadd.f32 %v6821_v58, %v516_v15  ;;  %v568_v22 = vmax.f32 %v525_v13, 0.0 }
  0xf8   : > { %v5729_v20 = vpop.f32.mrf.mxu0 }
  0xf9   : > { %5394 = vst [vmem:[#allocation2 + $0x8] sm:$0xff] %v5367_v17   ;;  %v5362_v21 = vpack.c.bf16 %v668_v18, %v667_v16  ;;  %v528_v23 = vadd.f32 %v5729_v20, %v6821_v58  ;;  %v566_v25 = vmax.f32 %v517_v19, 0.0  ;;  %v673_v30 = vmul.f32 %v625_v57, %v568_v22  ;;  %v6368_v17 = vld [vmem:[%s7733_s4 + $0xe8] sm:$0xff]   ;;  %v665_v18 = vpop.permute.xlu0 %664 }
  0xfa   : > { %v519_v24 = vpop.f32.mrf.mxu0 }
  0xfb   : > { %5363 = vst [vmem:[#allocation2] sm:$0xff] %v5362_v21   ;;  %v569_v26 = vmax.f32 %v528_v23, 0.0  ;;  %v520_v27 = vadd.f32 %v6821_v58, %v519_v24  ;;  %v671_v36 = vmul.f32 %v615_v54, %v566_v25  ;;  %v6372_v25 = vld [vmem:[%s7733_s4 + $0xe0] sm:$0xff]  }
  0xfc   : > { %v5732_v29 = vpop.f32.mrf.mxu0 }
  0xfd   : > { %v674_v31 = vmul.f32 %v630_v62, %v569_v26  ;;  %v567_v32 = vmax.f32 %v520_v27, 0.0  ;;  %v541_v33 = vadd.f32 %v5732_v29, %v6821_v58 }
  0xfe   : > { %v532_v35 = vpop.f32.mrf.mxu0 }
  0xff   : > { %v5377_v37 = vpack.c.bf16 %v674_v31, %v673_v30  ;;  %v672_v38 = vmul.f32 %v620_v56, %v567_v32  ;;  %v533_v39 = vadd.f32 %v6821_v58, %v532_v35  ;;  %v572_v40 = vmax.f32 %v541_v33, 0.0  ;;  %v6366_v56 = vld [vmem:[%s7733_s4 + $0xf0] sm:$0xff]  }
 0x100   : > { %v5733_v41 = vpop.f32.mrf.mxu0  ;;  %v6364_v45 = vld [vmem:[#allocation2 + $0x8] ss:$0 sps:$4 sm:$0xff]   ;;  %v1019_v47 = vld [vmem:[#allocation2 + $0xc] sm:$0x1] }
 0x101   : > { %5396 = vst [vmem:[#allocation2 + $0x18] sm:$0xff] %v5377_v37   ;;  %v5372_v42 = vpack.c.bf16 %v672_v38, %v671_v36  ;;  %v570_v43 = vmax.f32 %v533_v39, 0.0  ;;  %v544_v44 = vadd.f32 %v5733_v41, %v6821_v58  ;;  %v1018_v46 = vld [vmem:[#allocation2 + $0x8] sm:$0xf]  ;;  %v677_v61 = vmul.f32 %v645_v28, %v572_v40  ;;  %v1577_v2 = vld [vmem:[#allocation2 + $0xc] sm:$0x7]  ;;  %v660_v40 = vpop.permute.xlu1 %659 }
 0x102   : > { %v535_v50 = vpop.f32.mrf.mxu0  ;;  %v6362_v51 = vld [vmem:[#allocation2] sm:$0xff]   ;;  %v6836_v53 = vcombine.low %v1018_v46, %v1019_v47  ;;  %v1840_v7 = vld [vmem:[#allocation2 + $0xc] sm:$0xf]  ;;  %v4833_v12 = vcombine.low %v1018_v46, %v1577_v2 }
 0x103   : > { %5395 = vst [vmem:[#allocation2 + $0x10] sm:$0xff] %v5372_v42   ;;  %v573_v54 = vmax.f32 %v544_v44, 0.0  ;;  %v536_v55 = vadd.f32 %v6821_v58, %v535_v50  ;;  %v1016_v57 = vld [vmem:[#allocation2] sm:$0xf]  ;;  %v1017_v59 = vld [vmem:[#allocation2 + $0x4] sm:$0xf]  ;;  %v675_v62 = vmul.f32 %v635_v14, %v570_v43  ;;  %5774 = vmatprep.mubr.bf16.mxu0 %v6362_v51 }
 0x104   : > { %v5736_v63 = vpop.f32.mrf.mxu0  ;;  %v4729_v0 = vcombine.low %v1016_v57, %v1017_v59  ;;  %v1576_v1 = vld [vmem:[#allocation2] sm:$0x8]  ;;  %5775 = vmatmul.mubr.bf16.vlgmr.msra.gmra.mxu0 %v6364_v45  ;;  %v1056_v11 = vshll.u32 %v6836_v53, 16  ;;  %v6852_v26 = vrot.slane %v4833_v12, 3  ;;  %v6384_v12 = vld [vmem:[%s7733_s4 + $0x98] sm:$0xff]  }
 0x105   : > { %v678_v3 = vmul.f32 %v650_v60, %v573_v54  ;;  %v571_v4 = vmax.f32 %v536_v55, 0.0  ;;  %v557_v5 = vadd.f32 %v5736_v63, %v6821_v58  ;;  %v4832_v6 = vcombine.low %v1576_v1, %v1017_v59  ;;  %5799 = vmatpush3.bf16.msra.mxu0 %v6803_v49  ;;  %v6381_v1 = vld [vmem:[%s7733_s4 + $0xd0] sm:$0xff]  }
 0x106   : > { %v548_v8 = vpop.f32.mrf.mxu0  ;;  %v1049_v9 = vshrl.u32 %v4729_v0, 16  ;;  %v1051_v10 = vshll.u32 %v4729_v0, 16  ;;  %5800 = vmatprep.subr.bf16.mxu0 %v6366_v56  ;;  %v4884_v49 = vcombine.low %v1018_v46, %v1840_v7  ;;  %v6375_v46 = vld [vmem:[%s7733_s4 + $0xb0] sm:$0xff]   ;;  %v6383_v7 = vld [vmem:[%s7733_s4 + $0xc8] sm:$0xff]  }
 0x107   : > { %v5387_v13 = vpack.c.bf16 %v678_v3, %v677_v61  ;;  %v676_v14 = vmul.f32 %v640_v34, %v571_v4  ;;  %v576_v15 = vmax.f32 %v557_v5, 0.0  ;;  %v549_v16 = vadd.f32 %v6821_v58, %v548_v8  ;;  %v6377_v61 = vld [vmem:[%s7733_s4 + $0xa8] sm:$0xff]  }
 0x108   : > { %v5737_v19 = vpop.f32.mrf.mxu0  ;;  %v1053_v20 = vrot.slane %v1051_v10, 1  ;;  %v1601_v21 = vrot.slane %v4832_v6, 3  ;;  %v1863_v35 = vshrl.u32 %v4832_v6, 16  ;;  %v1866_v38 = vshll.u32 %v4832_v6, 16  ;;  %v6382_v6 = vld [vmem:[%s7733_s4 + $0xa0] sm:$0xff]  }
 0x109   : > { %5398 = vst [vmem:[#allocation2 + $0x28] sm:$0xff] %v5387_v13   ;;  %v5382_v22 = vpack.c.bf16 %v676_v14, %v675_v62  ;;  %v681_v23 = vmul.f32 %v665_v18, %v576_v15  ;;  %v574_v24 = vmax.f32 %v549_v16, 0.0  ;;  %5801 = vmatpush3.bf16.msra.mxu0 %v6366_v56  ;;  %v1871_v39 = vshrl.u32 %v4884_v49, 16  ;;  %v6385_v13 = vld [vmem:[%s7733_s4 + $0xc0] sm:$0xff]   ;;  %v6386_v18 = vld [vmem:[%s7733_s4 + $0x90] sm:$0xff]   ;;  %v6387_v19 = vld [vmem:[%s7733_s4 + $0x178] sm:$0xff]  }
 0x10a   : > { %v551_v27 = vpop.f32.mrf.mxu0  ;;  %v6369_v28 = vld [vmem:[#allocation2 + $0xc] sm:$0xf8]   ;;  %5802 = vmatprep.subr.bf16.mxu0 %v6368_v17  ;;  %v6370_v31 = vld [vmem:[#allocation2 + $0x14] sm:$0x7f]   ;;  %v6857_v32 = vsel %vm808_vm0, %v1601_v21, %v6852_v26  ;;  %v1054_v34 = vor.u32 %v1053_v20, %v1049_v9  ;;  %v1865_v42 = vrot.slane %v1863_v35, 3  ;;  %v1874_v43 = vshll.u32 %v4884_v49, 16 }
 0x10b   : > { %5397 = vst [vmem:[#allocation2 + $0x20] sm:$0xff] %v5382_v22   ;;  %v5358_v29 = vpack.c.bf16 %v681_v23, %v681_v23  ;;  %v552_v30 = vadd.f32 %v6821_v58, %v551_v27  ;;  %v809_v33 = vrot.slane %v6369_v28, 3  ;;  %v810_v37 = vrot.slane %v6370_v31, 3  ;;  %v6388_v49 = vld [vmem:[%s7733_s4 + $0x88] sm:$0xff]   ;;  %v6389_v22 = vld [vmem:[%s7733_s4 + $0x170] sm:$0xff]  }
 0x10c   : > { %v679_v41 = vmul.f32 %v6834_v48, %v574_v24  ;;  %v6860_v58 = vrot.slane %v1056_v11, 1  ;;  %v1868_v47 = vrot.slane %v1866_v38, 4  ;;  %v1873_v50 = vrot.slane %v1871_v39, 3  ;;  %v6376_v48 = vld [vmem:[%s7733_s4 + $0xd8] sm:$0xff]   ;;  %v6390_v24 = vld [vmem:[%s7733_s4 + $0x80] sm:$0xff]   ;;  %v6398_v38 = vld [vmem:[%s7733_s4 + $0x128] sm:$0xff]  }
 0x10d   : > { %757 = vst [vmem:[#allocation2 + $0x38] sm:$0xf] %v5358_v29  ;;  %v575_v36 = vmax.f32 %v552_v30, 0.0  ;;  %5803 = vmatpush3.bf16.msra.mxu0 %v6368_v17  ;;  %v811_v45 = vsel %vm808_vm0, %v809_v33, %v810_v37  ;;  %v1876_v57 = vrot.slane %v1874_v43, 4  ;;  %v6392_v29 = vld [vmem:[%s7733_s4 + $0x138] sm:$0xff]   ;;  %v6395_v30 = vld [vmem:[%s7733_s4 + $0x160] sm:$0xff]  }
 0x10e   : > { %5804 = vmatprep.subr.bf16.mxu0 %v6372_v25  ;;  %5754 = vmatprep.mubr.bf16.mxu1 %v811_v45  ;;  %v1059_v54 = vsel %vm1047_vm1, %v1054_v34, %v6860_v58  ;;  %v1869_v56 = vor.u32 %v1868_v47, %v1865_v42  ;;  %v1060_v31 = vshrl.u32 %v6836_v53, 16  ;;  %v6399_v39 = vld [vmem:[%s7733_s4 + $0x150] sm:$0xff]   ;;  %v6403_v42 = vld [vmem:[%s7733_s4 + $0x140] sm:$0xff]   ;;  %v6405_v45 = vld [vmem:[%s7733_s4 + $0x1f8] sm:$0xff]  }
 0x10f   : > { %v680_v44 = vmul.f32 %v660_v40, %v575_v36  ;;  %5755 = vmatmul.mubr.bf16.vlgmr.msra.gmra.mxu1 %v810_v37  ;;  %v6875_v63 = vor.u32 %v1876_v57, %v1873_v50  ;;  %v6396_v36 = vld [vmem:[%s7733_s4 + $0x130] sm:$0xff]   ;;  %v6397_v37 = vld [vmem:[%s7733_s4 + $0x158] sm:$0xff]   ;;  %v6400_v40 = vld [vmem:[%s7733_s4 + $0x120] sm:$0xff]  }
 0x110   : > { %v1167_v55 = vld [vmem:[#allocation2 + $0x28] sm:$0x3]  ;;  %5779 = vmatpush3.bf16.msra.mxu1 %v6815_v52  ;;  %5794 = vmatprep.mubr.bf16.mxu1 %v1059_v54  ;;  %v1062_v35 = vor.u32 %v1060_v31, %v6860_v58  ;;  %v6402_v58 = vld [vmem:[%s7733_s4 + $0x118] sm:$0xff]   ;;  %v6406_v43 = vld [vmem:[#allocation2 + $0x10] sm:$0xfc]  }
 0x111   : > { %v5392_v51 = vpack.c.bf16 %v680_v44, %v679_v41  ;;  %5805 = vmatpush3.bf16.msra.mxu0 %v6372_v25  ;;  %5780 = vmatprep.subr.bf16.mxu1 %v6375_v46  ;;  %v1436_v2 = vld [vmem:[#allocation2 + $0x28] sm:$0x7]  ;;  %v6882_v3 = vsel %vm1861_vm2, %v1869_v56, %v6875_v63  ;;  %v6404_v44 = vld [vmem:[%s7733_s4 + $0x110] sm:$0xff]   ;;  %v1736_v47 = vrot.slane %v6406_v43, 2  ;;  %v6412_v57 = vld [vmem:[%s7733_s4 + $0x1b8] sm:$0xff]  }
 0x112   : > { %v1166_v59 = vld [vmem:[#allocation2 + $0x24] sm:$0xf]  ;;  %v6378_v60 = vld [vmem:[#allocation2 + $0x1c] sm:$0xfc]   ;;  %5806 = vmatprep.subr.bf16.mxu0 %v6376_v48  ;;  %v6391_v25 = vld [vmem:[%s7733_s4 + $0x168] sm:$0xff]  }
 0x113   : > { %5399 = vst [vmem:[#allocation2 + $0x30] sm:$0xff] %v5392_v51   ;;  %v4756_v62 = vcombine.low %v1166_v59, %v1167_v55  ;;  %v1196_v0 = vrot.slane %v6378_v60, 2  ;;  %v4807_v4 = vcombine.low %v1166_v59, %v1436_v2  ;;  %v1459_v8 = vshrl.u32 %v6378_v60, 16  ;;  %v6401_v41 = vld [vmem:[%s7733_s4 + $0x148] sm:$0xff]   ;;  %v6409_v51 = vld [vmem:[%s7733_s4 + $0x1f0] sm:$0xff]   ;;  %v6410_v55 = vld [vmem:[%s7733_s4 + $0x100] sm:$0xff]  }
 0x114   : > { %5781 = vmatpush3.bf16.msra.mxu1 %v6375_v46  ;;  %v1462_v9 = vshll.u32 %v6378_v60, 16  ;;  %v6407_v46 = vld [vmem:[#allocation2 + $0x18] sm:$0x3f]   ;;  %v6411_v56 = vld [vmem:[%s7733_s4 + $0x1e8] sm:$0xff]   ;;  %v6415_v59 = vld [vmem:[%s7733_s4 + $0x1e0] sm:$0xff]  }
 0x115   : > { %v1197_v52 = vrot.slane %v4756_v62, 2  ;;  %5807 = vmatpush3.bf16.msra.mxu0 %v6376_v48  ;;  %5782 = vmatprep.subr.bf16.mxu1 %v6377_v61  ;;  %v1467_v10 = vshrl.u32 %v4807_v4, 16  ;;  %v1470_v11 = vshll.u32 %v4807_v4, 16  ;;  %v1461_v14 = vrot.slane %v1459_v8, 2  ;;  %v6408_v48 = vld [vmem:[%s7733_s4 + $0x108] sm:$0xff]   ;;  %v6416_v60 = vld [vmem:[%s7733_s4 + $0x1b0] sm:$0xff]  }
 0x116   : > { %5808 = vmatprep.subr.bf16.mxu0 %v6381_v1  ;;  %v1464_v15 = vrot.slane %v1462_v9, 3  ;;  %v1737_v50 = vrot.slane %v6407_v46, 2  ;;  %v6418_v62 = vld [vmem:[%s7733_s4 + $0x1a8] sm:$0xff]   ;;  %v6423_v2 = vld [vmem:[%s7733_s4 + $0x1c0] sm:$0xff]   ;;  %v6424_v4 = vld [vmem:[%s7733_s4 + $0x190] sm:$0xff]  }
 0x117   : > { %v1198_v5 = vsel %vm1195_vm3, %v1196_v0, %v1197_v52  ;;  %v1469_v16 = vrot.slane %v1467_v10, 2  ;;  %v1472_v17 = vrot.slane %v1470_v11, 3  ;;  %v6419_v0 = vld [vmem:[%s7733_s4 + $0x1d0] sm:$0xff]   ;;  %v6430_v9 = vld [vmem:[%s7733_s4 + $0x228] sm:$0xff]   ;;  %v6431_v10 = vld [vmem:[%s7733_s4 + $0x220] sm:$0xff]  }
 0x118   : > { %5814 = vmatprep.mubr.bf16.mxu0 %v1198_v5  ;;  %5783 = vmatpush3.bf16.msra.mxu1 %v6377_v61  ;;  %v1465_v20 = vor.u32 %v1464_v15, %v1461_v14  ;;  %v1738_v54 = vsel %vm1195_vm3, %v1736_v47, %v1737_v50  ;;  %v6417_v61 = vld [vmem:[%s7733_s4 + $0x1d8] sm:$0xff]   ;;  %v6425_v5 = vld [vmem:[%s7733_s4 + $0x188] sm:$0xff]   ;;  %v6429_v8 = vld [vmem:[%s7733_s4 + $0x230] sm:$0xff]  }
 0x119   : > { %5809 = vmatpush3.bf16.msra.mxu0 %v6381_v1  ;;  %5784 = vmatprep.subr.bf16.mxu1 %v6382_v6  ;;  %v6903_v21 = vor.u32 %v1472_v17, %v1469_v16  ;;  %v6420_v1 = vld [vmem:[%s7733_s4 + $0x1a0] sm:$0xff]   ;;  %v6434_v11 = vld [vmem:[%s7733_s4 + $0x208] sm:$0xff]   ;;  %v6437_v14 = vld [vmem:[%s7736_s7 + $0x30] sm:$0xff]  }
 0x11a   : > { %5810 = vmatprep.subr.bf16.mxu0 %v6383_v7  ;;  %v6393_v27 = vld [vmem:[#allocation2 + $0x2c] sm:$0xfe]   ;;  %v6918_v28 = vld [vmem:[#allocation2 + $0x34] sm:$0x1f]  }
 0x11b   : > { %v1474_v23 = vsel %vm1457_vm4, %v1465_v20, %v6903_v21  ;;  %v1332_v33 = vrot.slane %v6393_v27, 1  ;;  %v1333_v34 = vrot.slane %v6918_v28, 1  ;;  %v6439_v27 = vld [vmem:[%s7736_s7 + $0x28] sm:$0xff]   ;;  %v6440_v28 = vld [vmem:[%s7736_s7 + $0x70] sm:$0xff]   ;;  %v6443_v31 = vld [vmem:[%s7736_s7 + $0x18] sm:$0xff]  }
 0x11c   : > { %5785 = vmatpush3.bf16.msra.mxu1 %v6382_v6  ;;  %v6426_v6 = vld [vmem:[%s7733_s4 + $0x180] sm:$0xff]  }
 0x11d   : > { %5811 = vmatpush3.bf16.msra.mxu0 %v6383_v7  ;;  %5786 = vmatprep.subr.bf16.mxu1 %v6384_v12  ;;  %v1334_v53 = vsel %vm1331_vm5, %v1332_v33, %v1333_v34  ;;  %v6427_v7 = vld [vmem:[%s7733_s4 + $0x238] sm:$0xff]   ;;  %v6444_v33 = vld [vmem:[%s7736_s7 + $0x60] sm:$0xff]  }
 0x11e   : > { %5812 = vmatprep.subr.bf16.mxu0 %v6385_v13 }
 0x120   : > { %5787 = vmatpush3.bf16.msra.mxu1 %v6384_v12  ;;  %v6435_v12 = vld [vmem:[%s7733_s4 + $0x200] sm:$0xff]  }
 0x121   : > { %5813 = vmatpush3.bf16.msra.mxu0 %v6385_v13  ;;  %5788 = vmatprep.subr.bf16.mxu1 %v6386_v18  ;;  %v6436_v13 = vld [vmem:[%s7736_s7 + $0x38] sm:$0xff]  }
 0x122   : > { %5838 = vmatprep.subr.bf16.mxu0 %v6387_v19 }
 0x124   : > { %5789 = vmatpush3.bf16.msra.mxu1 %v6386_v18  ;;  %5815 = vmatmul.mubr.bf16.vlgmr.msra.gmra.mxu0 %v1197_v52  ;;  %v6422_v52 = vld [vmem:[%s7733_s4 + $0x198] sm:$0xff]  }
 0x125   : > { %5839 = vmatpush3.bf16.msra.mxu0 %v6387_v19  ;;  %5854 = vmatprep.mubr.bf16.mxu0 %v1474_v23 }
 0x126   : > { %5790 = vmatprep.subr.bf16.mxu1 %v6388_v49  ;;  %5840 = vmatprep.subr.bf16.mxu0 %v6389_v22 }
 0x128   : > { %5791 = vmatpush3.bf16.msra.mxu1 %v6388_v49 }
 0x129   : > { %5841 = vmatpush3.bf16.msra.mxu0 %v6389_v22  ;;  %5792 = vmatprep.subr.bf16.mxu1 %v6390_v24 }
 0x12a   : > { %5842 = vmatprep.subr.bf16.mxu0 %v6391_v25 }
 0x12c   : > { %5793 = vmatpush3.bf16.msra.mxu1 %v6390_v24  ;;  %v6605_v24 = vmov 0.0  }
 0x12d   : > { %5843 = vmatpush3.bf16.msra.mxu0 %v6391_v25  ;;  %5818 = vmatprep.subr.bf16.mxu1 %v6392_v29  ;;  %2016 = vst [vmem:[#allocation3 + $0x10] sm:$0xff] %v6605_v24  ;;  %2017 = vst [vmem:[#allocation3 + $0x18] sm:$0xff] %v6605_v24  ;;  %v6438_v25 = vld [vmem:[%s7736_s7 + $0x78] sm:$0xff]  }
 0x12e   : > { %5844 = vmatprep.subr.bf16.mxu0 %v6395_v30  ;;  %2018 = vst [vmem:[#allocation3 + $0x20] sm:$0x3f] %v6605_v24  ;;  %2014 = vst [vmem:[#allocation3] sm:$0xff] %v6605_v24 }
 0x12f   : > { %5795 = vmatmul.mubr.bf16.vlgmr.msra.gmra.mxu1 %v1062_v35  ;;  %2015 = vst [vmem:[#allocation3 + $0x8] sm:$0xff] %v6605_v24 }
 0x130   : > { %5819 = vmatpush3.bf16.msra.mxu1 %v6392_v29  ;;  %5834 = vmatprep.mubr.bf16.mxu1 %v1334_v53  ;;  %v6441_v29 = vld [vmem:[%s7736_s7 + $0x20] sm:$0xff]   ;;  %v6447_v53 = vld [vmem:[%s7736_s7 + $0x8] sm:$0xff]  }
 0x131   : > { %5845 = vmatpush3.bf16.msra.mxu0 %v6395_v30  ;;  %5820 = vmatprep.subr.bf16.mxu1 %v6396_v36  ;;  %v6442_v30 = vld [vmem:[%s7736_s7 + $0x68] sm:$0xff]  }
 0x132   : > { %5846 = vmatprep.subr.bf16.mxu0 %v6397_v37 }
 0x134   : > { %5821 = vmatpush3.bf16.msra.mxu1 %v6396_v36  ;;  %v6446_v36 = vld [vmem:[%s7736_s7 + $0x58] sm:$0xff]  }
 0x135   : > { %5847 = vmatpush3.bf16.msra.mxu0 %v6397_v37  ;;  %5822 = vmatprep.subr.bf16.mxu1 %v6398_v38 }
 0x136   : > { %5848 = vmatprep.subr.bf16.mxu0 %v6399_v39 }
 0x138   : > { %5823 = vmatpush3.bf16.msra.mxu1 %v6398_v38 }
 0x139   : > { %5849 = vmatpush3.bf16.msra.mxu0 %v6399_v39  ;;  %5824 = vmatprep.subr.bf16.mxu1 %v6400_v40  ;;  %v6448_v39 = vld [vmem:[%s7736_s7 + $0x50] sm:$0xff]  }
 0x13a   : > { %5850 = vmatprep.subr.bf16.mxu0 %v6401_v41 }
 0x13c   : > { %5825 = vmatpush3.bf16.msra.mxu1 %v6400_v40  ;;  %v6449_v40 = vld [vmem:[%s7736_s7] sm:$0xff]  }
 0x13d   : > { %5851 = vmatpush3.bf16.msra.mxu0 %v6401_v41  ;;  %5826 = vmatprep.subr.bf16.mxu1 %v6402_v58  ;;  %v6450_v41 = vld [vmem:[%s7736_s7 + $0x48] sm:$0xff]  }
 0x13e   : > { %5852 = vmatprep.subr.bf16.mxu0 %v6403_v42 }
 0x140   : > { %5827 = vmatpush3.bf16.msra.mxu1 %v6402_v58  ;;  %v7093_v58 = vld [vmem:[%s7736_s7 + $0xf8] sm:$0xff]  }
 0x141   : > { %5853 = vmatpush3.bf16.msra.mxu0 %v6403_v42  ;;  %5828 = vmatprep.subr.bf16.mxu1 %v6404_v44 }
 0x142   : > { %5878 = vmatprep.subr.bf16.mxu0 %v6405_v45 }
 0x144   : > { %5829 = vmatpush3.bf16.msra.mxu1 %v6404_v44  ;;  %5855 = vmatmul.mubr.bf16.vlgmr.msra.gmra.mxu0 %v6903_v21 }
 0x145   : > { %5879 = vmatpush3.bf16.msra.mxu0 %v6405_v45  ;;  %5894 = vmatprep.mubr.bf16.mxu0 %v1738_v54  ;;  %v6452_v45 = vld [vmem:[%s7736_s7 + $0x40] sm:$0xff]   ;;  %v7102_v54 = vld [vmem:[%s7736_s7 + $0xb8] sm:$0xff]  }
 0x146   : > { %5830 = vmatprep.subr.bf16.mxu1 %v6408_v48  ;;  %5880 = vmatprep.subr.bf16.mxu0 %v6409_v51 }
 0x148   : > { %5831 = vmatpush3.bf16.msra.mxu1 %v6408_v48 }
 0x149   : > { %5881 = vmatpush3.bf16.msra.mxu0 %v6409_v51  ;;  %5832 = vmatprep.subr.bf16.mxu1 %v6410_v55 }
 0x14a   : > { %5882 = vmatprep.subr.bf16.mxu0 %v6411_v56 }
 0x14c   : > { %5833 = vmatpush3.bf16.msra.mxu1 %v6410_v55 }
 0x14d   : > { %5883 = vmatpush3.bf16.msra.mxu0 %v6411_v56  ;;  %5858 = vmatprep.subr.bf16.mxu1 %v6412_v57 }
 0x14e   : > { %5884 = vmatprep.subr.bf16.mxu0 %v6415_v59 }
 0x14f   : > { %5835 = vmatmul.mubr.bf16.vlgmr.msra.gmra.mxu1 %v1333_v34  ;;  %v6445_v34 = vld [vmem:[%s7736_s7 + $0x10] sm:$0xff]  }
 0x150   : > { %5859 = vmatpush3.bf16.msra.mxu1 %v6412_v57  ;;  %5874 = vmatprep.mubr.bf16.mxu1 %v6857_v32  ;;  %v6421_v32 = vld [vmem:[%s7733_s4 + $0x1c8] sm:$0xff]  }
 0x151   : > { %5885 = vmatpush3.bf16.msra.mxu0 %v6415_v59  ;;  %5860 = vmatprep.subr.bf16.mxu1 %v6416_v60 }
 0x152   : > { %5886 = vmatprep.subr.bf16.mxu0 %v6417_v61 }
 0x154   : > { %5861 = vmatpush3.bf16.msra.mxu1 %v6416_v60 }
 0x155   : > { %5887 = vmatpush3.bf16.msra.mxu0 %v6417_v61  ;;  %5862 = vmatprep.subr.bf16.mxu1 %v6418_v62 }
 0x156   : > { %5888 = vmatprep.subr.bf16.mxu0 %v6419_v0 }
 0x158   : > { %5863 = vmatpush3.bf16.msra.mxu1 %v6418_v62 }
 0x159   : > { %5889 = vmatpush3.bf16.msra.mxu0 %v6419_v0  ;;  %5864 = vmatprep.subr.bf16.mxu1 %v6420_v1 }
 0x15a   : > { %5890 = vmatprep.subr.bf16.mxu0 %v6421_v32 }
 0x15c   : > { %5865 = vmatpush3.bf16.msra.mxu1 %v6420_v1 }
 0x15d   : > { %5891 = vmatpush3.bf16.msra.mxu0 %v6421_v32  ;;  %5866 = vmatprep.subr.bf16.mxu1 %v6422_v52 }
 0x15e   : > { %5892 = vmatprep.subr.bf16.mxu0 %v6423_v2 }
 0x160   : > { %5867 = vmatpush3.bf16.msra.mxu1 %v6422_v52 }
 0x161   : > { %5893 = vmatpush3.bf16.msra.mxu0 %v6423_v2  ;;  %5868 = vmatprep.subr.bf16.mxu1 %v6424_v4 }
 0x162   : > { %5918 = vmatprep.subr.bf16.mxu0 %v6438_v25 }
 0x164   : > { %5869 = vmatpush3.bf16.msra.mxu1 %v6424_v4  ;;  %5895 = vmatmul.mubr.bf16.vlgmr.msra.gmra.mxu0 %v1737_v50 }
 0x165   : > { %5870 = vmatprep.subr.bf16.mxu1 %v6425_v5  ;;  %5919 = vmatpush3.bf16.msra.mxu0 %v6438_v25 }
 0x166   : > { %5920 = vmatprep.subr.bf16.mxu0 %v6440_v28 }
 0x168   : > { %5871 = vmatpush3.bf16.msra.mxu1 %v6425_v5 }
 0x169   : > { %5872 = vmatprep.subr.bf16.mxu1 %v6426_v6  ;;  %5921 = vmatpush3.bf16.msra.mxu0 %v6440_v28 }
 0x16a   : > { %5922 = vmatprep.subr.bf16.mxu0 %v6442_v30 }
 0x16c   : > { %5873 = vmatpush3.bf16.msra.mxu1 %v6426_v6 }
 0x16d   : > { %5898 = vmatprep.subr.bf16.mxu1 %v6427_v7  ;;  %5923 = vmatpush3.bf16.msra.mxu0 %v6442_v30 }
 0x16e   : > { %5924 = vmatprep.subr.bf16.mxu0 %v6444_v33 }
 0x16f   : > { %5875 = vmatmul.mubr.bf16.vlgmr.msra.gmra.mxu1 %v6852_v26  ;;  %v6432_v26 = vld [vmem:[%s7733_s4 + $0x218] sm:$0xff]  }
 0x170   : > { %5899 = vmatpush3.bf16.msra.mxu1 %v6427_v7  ;;  %5914 = vmatprep.mubr.bf16.mxu1 %v6882_v3  ;;  %v6433_v3 = vld [vmem:[%s7733_s4 + $0x210] sm:$0xff]  }
 0x171   : > { %5900 = vmatprep.subr.bf16.mxu1 %v6429_v8  ;;  %5925 = vmatpush3.bf16.msra.mxu0 %v6444_v33 }
 0x172   : > { %5926 = vmatprep.subr.bf16.mxu0 %v6446_v36 }
 0x174   : > { %5901 = vmatpush3.bf16.msra.mxu1 %v6429_v8 }
 0x175   : > { %5902 = vmatprep.subr.bf16.mxu1 %v6430_v9  ;;  %5927 = vmatpush3.bf16.msra.mxu0 %v6446_v36 }
 0x176   : > { %5928 = vmatprep.subr.bf16.mxu0 %v6448_v39 }
 0x178   : > { %5903 = vmatpush3.bf16.msra.mxu1 %v6430_v9 }
 0x179   : > { %5904 = vmatprep.subr.bf16.mxu1 %v6431_v10  ;;  %5929 = vmatpush3.bf16.msra.mxu0 %v6448_v39 }
 0x17a   : > { %5930 = vmatprep.subr.bf16.mxu0 %v6450_v41 }
 0x17c   : > { %5905 = vmatpush3.bf16.msra.mxu1 %v6431_v10 }
 0x17d   : > { %5906 = vmatprep.subr.bf16.mxu1 %v6432_v26  ;;  %5931 = vmatpush3.bf16.msra.mxu0 %v6450_v41 }
 0x17e   : > { %5932 = vmatprep.subr.bf16.mxu0 %v6452_v45 }
 0x180   : > { %5907 = vmatpush3.bf16.msra.mxu1 %v6432_v26 }
 0x181   : > { %5908 = vmatprep.subr.bf16.mxu1 %v6433_v3  ;;  %5933 = vmatpush3.bf16.msra.mxu0 %v6452_v45 }
 0x182   : > { %5958 = vmatprep.subr.bf16.mxu0 %v7102_v54 }
 0x184   : > { %5909 = vmatpush3.bf16.msra.mxu1 %v6433_v3 }
 0x185   : > { %5910 = vmatprep.subr.bf16.mxu1 %v6434_v11 }
 0x188   : > { %5911 = vmatpush3.bf16.msra.mxu1 %v6434_v11 }
 0x189   : > { %5912 = vmatprep.subr.bf16.mxu1 %v6435_v12 }
 0x18c   : > { %5913 = vmatpush3.bf16.msra.mxu1 %v6435_v12 }
 0x18d   : > { %5938 = vmatprep.subr.bf16.mxu1 %v6436_v13 }
 0x18f   : > { %5915 = vmatmul.mubr.bf16.vlgmr.msra.gmra.mxu1 %v6875_v63 }
 0x190   : > { %5939 = vmatpush3.bf16.msra.mxu1 %v6436_v13 }
 0x191   : > { %5940 = vmatprep.subr.bf16.mxu1 %v6437_v14 }
 0x194   : > { %5941 = vmatpush3.bf16.msra.mxu1 %v6437_v14 }
 0x195   : > { %5942 = vmatprep.subr.bf16.mxu1 %v6439_v27 }
 0x198   : > { %5943 = vmatpush3.bf16.msra.mxu1 %v6439_v27 }
 0x199   : > { %5944 = vmatprep.subr.bf16.mxu1 %v6441_v29 }
 0x19c   : > { %5945 = vmatpush3.bf16.msra.mxu1 %v6441_v29 }
 0x19d   : > { %5946 = vmatprep.subr.bf16.mxu1 %v6443_v31 }
 0x1a0   : > { %5947 = vmatpush3.bf16.msra.mxu1 %v6443_v31 }
 0x1a1   : > { %5948 = vmatprep.subr.bf16.mxu1 %v6445_v34 }
 0x1a4   : > { %5949 = vmatpush3.bf16.msra.mxu1 %v6445_v34 }
 0x1a5   : > { %5950 = vmatprep.subr.bf16.mxu1 %v6447_v53 }
 0x1a8   : > { %5951 = vmatpush3.bf16.msra.mxu1 %v6447_v53 }
 0x1a9   : > { %5952 = vmatprep.subr.bf16.mxu1 %v6449_v40 }
 0x1ac   : > { %5953 = vmatpush3.bf16.msra.mxu1 %v6449_v40 }
 0x1ad   : > { %5978 = vmatprep.subr.bf16.mxu1 %v7093_v58 }
 0x1c4   : > { %v5776_v15 = vpop.f32.mrf.mxu0 }
 0x1c6   : > { %v1002_v16 = vpop.f32.mrf.mxu0 }
 0x1c8   : > { %v5777_v17 = vpop.f32.mrf.mxu0 }
 0x1c9   : > { %v1999_v17 = vpop.permute.xlu1 %1998 }
 0x1ca   : > { %v1005_v49 = vpop.f32.mrf.mxu0 }
 0x1cd   : > { %v2009_v30 = vpop.permute.xlu1 %2008 }
 0x1cf   : > { %v5756_v18 = vpop.f32.mrf.mxu1 }
 0x1d0   : > { %v1011_v19 = vadd.f32 %v5776_v15, %v5756_v18 }
 0x1d1   : > { %v896_v20 = vpop.f32.mrf.mxu1 }
 0x1d2   : > { %v1003_v21 = vadd.f32 %v1002_v16, %v896_v20 }
 0x1d3   : > { %v5757_v63 = vpop.f32.mrf.mxu1 }
 0x1d5   : > { %v899_v22 = vpop.f32.mrf.mxu1 }
 0x1d6   : > { %v1006_v23 = vadd.f32 %v1005_v49, %v899_v22 }
 0x1e4   : > { %v5816_v35 = vpop.f32.mrf.mxu0 }
 0x1e6   : > { %v1283_v37 = vpop.f32.mrf.mxu0 }
 0x1e8   : > { %v5817_v38 = vpop.f32.mrf.mxu0 }
 0x1e9   : > { %v2004_v38 = vpop.permute.xlu0 %2003 }
 0x1ea   : > { %v1286_v56 = vpop.f32.mrf.mxu0 }
 0x1ef   : > { %v5796_v42 = vpop.f32.mrf.mxu1 }
 0x1f0   : > { %v1163_v43 = vadd.f32 %v5796_v42, %v1011_v19  ;;  %v4893_v19 = vld [vmem:[%s7734_s5] ss:$0 sm:$0xff] }
 0x1f1   : > { %v1147_v44 = vpop.f32.mrf.mxu1 }
 0x1f2   : > { %v1161_v46 = vadd.f32 %v1147_v44, %v1003_v21  ;;  %v1299_v47 = vadd.f32 %v5816_v35, %v1163_v43 }
 0x1f3   : > { %v5797_v50 = vpop.f32.mrf.mxu1 }
 0x1f4   : > { %v1297_v48 = vadd.f32 %v1283_v37, %v1161_v46 }
 0x1f5   : > { %v1150_v51 = vpop.f32.mrf.mxu1 }
 0x1f6   : > { %v1162_v55 = vadd.f32 %v1150_v51, %v1006_v23  ;;  %v6453_v51 = vld [vmem:[%s7736_s7 + $0xf0] sm:$0xff]  }
 0x1f8   : > { %v1298_v57 = vadd.f32 %v1286_v56, %v1162_v55 }
 0x204   : > { %v5856_v59 = vpop.f32.mrf.mxu0 }
 0x206   : > { %v1559_v60 = vpop.f32.mrf.mxu0 }
 0x208   : > { %v5857_v61 = vpop.f32.mrf.mxu0 }
 0x20a   : > { %v1562_v5 = vpop.f32.mrf.mxu0 }
 0x20f   : > { %v5836_v62 = vpop.f32.mrf.mxu1 }
 0x210   : > { %v1435_v0 = vadd.f32 %v5836_v62, %v1299_v47 }
 0x211   : > { %v1419_v1 = vpop.f32.mrf.mxu1 }
 0x212   : > { %v1433_v32 = vadd.f32 %v1419_v1, %v1297_v48  ;;  %v1575_v52 = vadd.f32 %v5856_v59, %v1435_v0  ;;  %v6455_v1 = vld [vmem:[%s7736_s7 + $0xe8] sm:$0xff]  }
 0x213   : > { %v5837_v2 = vpop.f32.mrf.mxu1 }
 0x214   : > { %v1573_v4 = vadd.f32 %v1559_v60, %v1433_v32 }
 0x215   : > { %v1422_v9 = vpop.f32.mrf.mxu1 }
 0x216   : > { %v1434_v11 = vadd.f32 %v1422_v9, %v1298_v57 }
 0x218   : > { %v1574_v15 = vadd.f32 %v1562_v5, %v1434_v11 }
 0x224   : > { %v5896_v6 = vpop.f32.mrf.mxu0 }
 0x226   : > { %v1823_v7 = vpop.f32.mrf.mxu0 }
 0x228   : > { %v5897_v8 = vpop.f32.mrf.mxu0 }
 0x22a   : > { %v1826_v24 = vpop.f32.mrf.mxu0 }
 0x22f   : > { %v5876_v10 = vpop.f32.mrf.mxu1 }
 0x230   : > { %v1704_v12 = vadd.f32 %v5876_v10, %v1575_v52 }
 0x231   : > { %v1688_v26 = vpop.f32.mrf.mxu1 }
 0x232   : > { %v1702_v13 = vadd.f32 %v1688_v26, %v1573_v4  ;;  %v1839_v16 = vadd.f32 %v5896_v6, %v1704_v12  ;;  %v6456_v6 = vld [vmem:[%s7736_s7 + $0xb0] sm:$0xff]   ;;  %v6458_v12 = vld [vmem:[%s7736_s7 + $0xa8] sm:$0xff]  }
 0x233   : > { %v5877_v3 = vpop.f32.mrf.mxu1 }
 0x234   : > { %v1837_v63 = vadd.f32 %v1823_v7, %v1702_v13  ;;  %v6457_v7 = vld [vmem:[%s7736_s7 + $0xe0] sm:$0xff]  }
 0x235   : > { %v1691_v14 = vpop.f32.mrf.mxu1 }
 0x236   : > { %v1703_v20 = vadd.f32 %v1691_v14, %v1574_v15  ;;  %v6460_v14 = vld [vmem:[%s7736_s7 + $0xa0] sm:$0xff]   ;;  %v6461_v15 = vld [vmem:[%s7736_s7 + $0xd0] sm:$0xff]  }
 0x238   : > { %v1838_v29 = vadd.f32 %v1826_v24, %v1703_v20  ;;  %v6466_v20 = vld [vmem:[%s7736_s7 + $0x88] sm:$0xff]  }
 0x24f   : > { %v5916_v18 = vpop.f32.mrf.mxu1 }
 0x250   : > { %v1979_v21 = vadd.f32 %v5916_v18, %v1839_v16  ;;  %v6462_v16 = vld [vmem:[%s7736_s7 + $0x98] sm:$0xff]   ;;  %v6464_v18 = vld [vmem:[%s7736_s7 + $0x90] sm:$0xff]  }
 0x251   : > { %v1963_v49 = vpop.f32.mrf.mxu1 }
 0x252   : > { %v1989_v22 = vadd.f32 %v4893_v19, %v1979_v21  ;;  %v1977_v23 = vadd.f32 %v1963_v49, %v1837_v63  ;;  %v6467_v21 = vld [vmem:[%s7736_s7 + $0x178] sm:$0xff]  }
 0x253   : > { %v5917_v25 = vpop.f32.mrf.mxu1 }
 0x254   : > { %v1992_v27 = vmax.f32 %v1989_v22, 0.0  ;;  %v1987_v28 = vadd.f32 %v4893_v19, %v1977_v23  ;;  %v6468_v22 = vld [vmem:[%s7736_s7 + $0x80] sm:$0xff]   ;;  %v6469_v23 = vld [vmem:[%s7736_s7 + $0x170] sm:$0xff]  }
 0x255   : > { %v1966_v31 = vpop.f32.mrf.mxu1 }
 0x256   : > { %v2013_v33 = vmul.f32 %v2009_v30, %v1992_v27  ;;  %v1990_v34 = vmax.f32 %v1987_v28, 0.0  ;;  %v1978_v35 = vadd.f32 %v1966_v31, %v1838_v29  ;;  %v6470_v30 = vld [vmem:[%s7736_s7 + $0x138] sm:$0xff]   ;;  %v6471_v31 = vld [vmem:[%s7736_s7 + $0x168] sm:$0xff]  }
 0x258   : > { %2021 = vst [vmem:[#allocation3 + $0x17] sm:$0xff] %v2013_v33  ;;  %v2011_v36 = vmul.f32 %v1999_v17, %v1990_v34  ;;  %v1988_v37 = vadd.f32 %v4893_v19, %v1978_v35  ;;  %v6463_v17 = vld [vmem:[%s7736_s7 + $0xc8] sm:$0xff]   ;;  %v6465_v19 = vld [vmem:[%s7736_s7 + $0xc0] sm:$0xff]   ;;  %v6472_v35 = vld [vmem:[%s7736_s7 + $0x130] sm:$0xff]  }
 0x25a   : > { %2019 = vst [vmem:[#allocation3 + $0x7] sm:$0xff] %v2011_v36  ;;  %v1991_v53 = vmax.f32 %v1988_v37, 0.0  ;;  %v6473_v36 = vld [vmem:[%s7736_s7 + $0x160] sm:$0xff]  }
 0x25c   : > { %v2012_v39 = vmul.f32 %v2004_v38, %v1991_v53  ;;  %v6474_v53 = vld [vmem:[%s7736_s7 + $0x128] sm:$0xff]   ;;  %v6475_v38 = vld [vmem:[%s7736_s7 + $0x158] sm:$0xff]  }
 0x25e   : > { %2020 = vst [vmem:[#allocation3 + $0xf] sm:$0xff] %v2012_v39  ;;  %v6476_v39 = vld [vmem:[%s7736_s7 + $0x120] sm:$0xff]  }
 0x25f   : > { %v2025_v41 = vld [vmem:[#allocation3 + $0x18] sm:$0xff] }
 0x260   : > { %v2030_v47 = vmax.f32 %v2025_v41, 0.0  ;;  %v6478_v41 = vld [vmem:[%s7736_s7 + $0x118] sm:$0xff]  }
 0x261   : > { %v2022_v40 = vld [vmem:[#allocation3] sm:$0xff] }
 0x262   : > { %v2027_v44 = vmax.f32 %v2022_v40, 0.0  ;;  %v6477_v40 = vld [vmem:[%s7736_s7 + $0x150] sm:$0xff]  }
 0x265   : > { %v2023_v42 = vld [vmem:[#allocation3 + $0x8] sm:$0xff]  ;;  %v2024_v43 = vld [vmem:[#allocation3 + $0x10] sm:$0xff] }
 0x266   : > { %v2028_v45 = vmax.f32 %v2023_v42, 0.0  ;;  %v2029_v46 = vmax.f32 %v2024_v43, 0.0  ;;  %v6479_v42 = vld [vmem:[%s7736_s7 + $0x148] sm:$0xff]   ;;  %v6480_v43 = vld [vmem:[%s7736_s7 + $0x110] sm:$0xff]  }
 0x268   : > { %v7108_v50 = vpack.c.bf16 %v2028_v45, %v2027_v44  ;;  %v7110_v48 = vpack.c.bf16 %v2030_v47, %v2029_v46  ;;  %v6481_v44 = vld [vmem:[%s7736_s7 + $0x140] sm:$0xff]  }
 0x26a   : > { %5954 = vmatprep.mubr.bf16.mxu1 %v7108_v50  ;;  %v2417_v55 = vrot.slane %v7108_v50, 3  ;;  %v2418_v56 = vrot.slane %v7110_v48, 3  ;;  %v7119_v57 = vshll.u32 %v7108_v50, 16  ;;  %v7123_v59 = vshll.u32 %v7110_v48, 16 }
 0x26b   : > { %5955 = vmatmul.mubr.bf16.vlgmr.msra.gmra.mxu1 %v7110_v48  ;;  %v7130_v61 = vshrl.u32 %v7108_v50, 16  ;;  %v2296_v52 = vrot.slane %v7108_v50, 1  ;;  %v2297_v2 = vrot.slane %v7110_v48, 1  ;;  %v2787_v8 = vrot.slane %v7108_v50, 6 }
 0x26c   : > { %5979 = vmatpush3.bf16.msra.mxu1 %v7093_v58  ;;  %v2419_v60 = vsel %vm808_vm0, %v2417_v55, %v2418_v56  ;;  %v2073_v62 = vrot.slane %v7119_v57, 1  ;;  %v2078_v0 = vrot.slane %v7123_v59, 1  ;;  %v7139_v58 = vshrl.u32 %v7110_v48, 16  ;;  %v6483_v55 = vld [vmem:[%s7736_s7 + $0x1f8] sm:$0xff]  }
 0x26d   : > { %5994 = vmatprep.mubr.bf16.mxu1 %v2419_v60  ;;  %5980 = vmatprep.subr.bf16.mxu1 %v6453_v51  ;;  %v2788_v9 = vrot.slane %v7110_v48, 6  ;;  %v3046_v10 = vrot.slane %v7108_v50, 7  ;;  %v2298_v26 = vsel %vm1331_vm5, %v2296_v52, %v2297_v2  ;;  %v3047_v3 = vrot.slane %v7110_v48, 7  ;;  %v6490_v52 = vld [vmem:[%s7736_s7 + $0x1a8] sm:$0xff]  }
 0x26e   : > { %v2074_v32 = vor.u32 %v2073_v62, %v7130_v61  ;;  %v2082_v5 = vor.u32 %v7139_v58, %v2078_v0  ;;  %v2664_v63 = vrot.slane %v7108_v50, 4  ;;  %v2665_v49 = vrot.slane %v7110_v48, 4  ;;  %v6486_v62 = vld [vmem:[%s7736_s7 + $0x1b8] sm:$0xff]   ;;  %v6511_v48 = vld [vmem:[%s7737_s8 + $0x20] sm:$0xff]  }
 0x26f   : > { %v7162_v11 = vsel %vm2786_vm6, %v2787_v8, %v2788_v9  ;;  %v7170_v13 = vsel %vm3045_vm7, %v3046_v10, %v3047_v3  ;;  %v2538_v24 = vrot.slane %v7130_v61, 3  ;;  %v2539_v25 = vrot.slane %v7119_v57, 4  ;;  %v6494_v8 = vld [vmem:[%s7736_s7 + $0x198] sm:$0xff]   ;;  %v6495_v10 = vld [vmem:[%s7736_s7 + $0x1c8] sm:$0xff]  }
 0x270   : > { %5981 = vmatpush3.bf16.msra.mxu1 %v6453_v51  ;;  %v2079_v4 = vsel %vm1047_vm1, %v2074_v32, %v2078_v0  ;;  %v2541_v27 = vrot.slane %v7139_v58, 3  ;;  %v2542_v28 = vrot.slane %v7123_v59, 4  ;;  %v2666_v29 = vsel %vm2663_vm8, %v2664_v63, %v2665_v49  ;;  %v6482_v51 = vld [vmem:[%s7736_s7 + $0x108] sm:$0xff]   ;;  %v6489_v32 = vld [vmem:[%s7736_s7 + $0x1e0] sm:$0xff]   ;;  %v6501_v63 = vld [vmem:[%s7736_s7 + $0x230] sm:$0xff]  }
 0x271   : > { %5934 = vmatprep.mubr.bf16.mxu0 %v2079_v4  ;;  %5982 = vmatprep.subr.bf16.mxu1 %v6455_v1  ;;  %v2540_v33 = vor.u32 %v2539_v25, %v2538_v24  ;;  %v2911_v45 = vrot.slane %v7130_v61, 6  ;;  %v2912_v46 = vrot.slane %v7119_v57, 7  ;;  %v2914_v47 = vrot.slane %v7139_v58, 6  ;;  %v6484_v57 = vld [vmem:[%s7736_s7 + $0x100] sm:$0xff]   ;;  %v6487_v0 = vld [vmem:[%s7736_s7 + $0x1e8] sm:$0xff]  }
 0x272   : > { %5935 = vmatmul.mubr.bf16.vlgmr.msra.gmra.mxu0 %v2082_v5  ;;  %v7222_v34 = vor.u32 %v2542_v28, %v2541_v27  ;;  %v2915_v50 = vrot.slane %v7123_v59, 7  ;;  %v6485_v59 = vld [vmem:[%s7736_s7 + $0x1f0] sm:$0xff]   ;;  %v2026_v58 = vld [vmem:[#allocation3 + $0x20] sm:$0x3f]  ;;  %v6506_v24 = vld [vmem:[%s7736_s7 + $0x208] sm:$0xff]  }
 0x273   : > { %5959 = vmatpush3.bf16.msra.mxu0 %v7102_v54  ;;  %5974 = vmatprep.mubr.bf16.mxu0 %v2298_v26  ;;  %v6459_v54 = vld [vmem:[%s7736_s7 + $0xd8] sm:$0xff]   ;;  %v2031_v4 = vmax.f32 %v2026_v58, 0.0  ;;  %v6492_v5 = vld [vmem:[%s7736_s7 + $0x1a0] sm:$0xff]  }
 0x274   : > { %5983 = vmatpush3.bf16.msra.mxu1 %v6455_v1  ;;  %5960 = vmatprep.subr.bf16.mxu0 %v6456_v6  ;;  %v2544_v37 = vsel %vm1861_vm2, %v2540_v33, %v7222_v34  ;;  %v7268_v60 = vor.u32 %v2915_v50, %v2914_v47  ;;  %v6488_v1 = vld [vmem:[%s7736_s7 + $0x1b0] sm:$0xff]   ;;  %v6507_v25 = vld [vmem:[%s7736_s7 + $0x200] sm:$0xff]   ;;  %v6518_v47 = vld [vmem:[%s7736_s7 + $0x2b8] sm:$0xff]  }
 0x275   : > { %5984 = vmatprep.subr.bf16.mxu1 %v6457_v7 }
 0x277   : > { %5961 = vmatpush3.bf16.msra.mxu0 %v6456_v6  ;;  %v6493_v6 = vld [vmem:[%s7736_s7 + $0x1d0] sm:$0xff]  }
 0x278   : > { %5985 = vmatpush3.bf16.msra.mxu1 %v6457_v7  ;;  %5962 = vmatprep.subr.bf16.mxu0 %v6458_v12  ;;  %v7306_v7 = vpack.c.bf16 %v2031_v4, %v2031_v4 }
 0x279   : > { %5986 = vmatprep.subr.bf16.mxu1 %v6459_v54 }
 0x27a   : > { %v2919_v26 = vshrl.u32 %v7306_v7, 16  ;;  %v3049_v27 = vrot.slane %v7306_v7, 7 }
 0x27b   : > { %5963 = vmatpush3.bf16.msra.mxu0 %v6458_v12  ;;  %v6496_v12 = vld [vmem:[%s7736_s7 + $0x190] sm:$0xff]  }
 0x27c   : > { %5987 = vmatpush3.bf16.msra.mxu1 %v6459_v54  ;;  %5964 = vmatprep.subr.bf16.mxu0 %v6460_v14  ;;  %v6497_v54 = vld [vmem:[%s7736_s7 + $0x1c0] sm:$0xff]   ;;  %v3050_v28 = vsel %vm3045_vm7, %v3047_v3, %v3049_v27  ;;  %v6512_v3 = vld [vmem:[%s7737_s8 + $0x18] sm:$0xff]  }
 0x27d   : > { %5988 = vmatprep.subr.bf16.mxu1 %v6461_v15 }
 0x27f   : > { %5965 = vmatpush3.bf16.msra.mxu0 %v6460_v14  ;;  %v2921_v14 = vrot.slane %v2919_v26, 6 }
 0x280   : > { %5989 = vmatpush3.bf16.msra.mxu1 %v6461_v15  ;;  %5966 = vmatprep.subr.bf16.mxu0 %v6462_v16 }
 0x281   : > { %5990 = vmatprep.subr.bf16.mxu1 %v6463_v17 }
 0x283   : > { %5967 = vmatpush3.bf16.msra.mxu0 %v6462_v16  ;;  %v6498_v16 = vld [vmem:[%s7736_s7 + $0x188] sm:$0xff]  }
 0x284   : > { %5991 = vmatpush3.bf16.msra.mxu1 %v6463_v17  ;;  %5968 = vmatprep.subr.bf16.mxu0 %v6464_v18 }
 0x285   : > { %5992 = vmatprep.subr.bf16.mxu1 %v6465_v19 }
 0x287   : > { %5969 = vmatpush3.bf16.msra.mxu0 %v6464_v18  ;;  %v6499_v18 = vld [vmem:[%s7736_s7 + $0x180] sm:$0xff]  }
 0x288   : > { %5993 = vmatpush3.bf16.msra.mxu1 %v6465_v19  ;;  %5970 = vmatprep.subr.bf16.mxu0 %v6466_v20 }
 0x289   : > { %6018 = vmatprep.subr.bf16.mxu1 %v6467_v21 }
 0x28b   : > { %5971 = vmatpush3.bf16.msra.mxu0 %v6466_v20  ;;  %5995 = vmatmul.mubr.bf16.vlgmr.msra.gmra.mxu1 %v2418_v56  ;;  %v2913_v56 = vor.u32 %v2912_v46, %v2911_v45  ;;  %v6500_v20 = vld [vmem:[%s7736_s7 + $0x238] sm:$0xff]   ;;  %v6515_v45 = vld [vmem:[%s7737_s8] sm:$0xff]  }
 0x28c   : > { %6019 = vmatpush3.bf16.msra.mxu1 %v6467_v21  ;;  %6034 = vmatprep.mubr.bf16.mxu1 %v2666_v29  ;;  %v2790_v21 = vrot.slane %v7306_v7, 6  ;;  %v6508_v29 = vld [vmem:[%s7737_s8 + $0x38] sm:$0xff]  }
 0x28d   : > { %5972 = vmatprep.subr.bf16.mxu0 %v6468_v22  ;;  %6020 = vmatprep.subr.bf16.mxu1 %v6469_v23  ;;  %v2917_v61 = vsel %vm2910_vm9, %v2913_v56, %v7268_v60  ;;  %v6516_v46 = vld [vmem:[%s7736_s7 + $0x278] sm:$0xff]  }
 0x28f   : > { %5973 = vmatpush3.bf16.msra.mxu0 %v6468_v22  ;;  %v6502_v22 = vld [vmem:[%s7736_s7 + $0x228] sm:$0xff]  }
 0x290   : > { %6021 = vmatpush3.bf16.msra.mxu1 %v6469_v23  ;;  %5998 = vmatprep.subr.bf16.mxu0 %v6470_v30  ;;  %v6503_v23 = vld [vmem:[%s7736_s7 + $0x220] sm:$0xff]  }
 0x291   : > { %6022 = vmatprep.subr.bf16.mxu1 %v6471_v31 }
 0x292   : > { %5975 = vmatmul.mubr.bf16.vlgmr.msra.gmra.mxu0 %v2297_v2  ;;  %v6491_v2 = vld [vmem:[%s7736_s7 + $0x1d8] sm:$0xff]  }
 0x293   : > { %5999 = vmatpush3.bf16.msra.mxu0 %v6470_v30  ;;  %6014 = vmatprep.mubr.bf16.mxu0 %v2544_v37  ;;  %v6509_v30 = vld [vmem:[%s7737_s8 + $0x30] sm:$0xff]  }
 0x294   : > { %6023 = vmatpush3.bf16.msra.mxu1 %v6471_v31  ;;  %6000 = vmatprep.subr.bf16.mxu0 %v6472_v35  ;;  %v6510_v31 = vld [vmem:[%s7737_s8 + $0x28] sm:$0xff]  }
 0x295   : > { %6024 = vmatprep.subr.bf16.mxu1 %v6473_v36 }
 0x297   : > { %6001 = vmatpush3.bf16.msra.mxu0 %v6472_v35 }
 0x298   : > { %6025 = vmatpush3.bf16.msra.mxu1 %v6473_v36  ;;  %6002 = vmatprep.subr.bf16.mxu0 %v6474_v53 }
 0x299   : > { %6026 = vmatprep.subr.bf16.mxu1 %v6475_v38 }
 0x29b   : > { %6003 = vmatpush3.bf16.msra.mxu0 %v6474_v53 }
 0x29c   : > { %6027 = vmatpush3.bf16.msra.mxu1 %v6475_v38  ;;  %6004 = vmatprep.subr.bf16.mxu0 %v6476_v39 }
 0x29d   : > { %6028 = vmatprep.subr.bf16.mxu1 %v6477_v40 }
 0x29f   : > { %6005 = vmatpush3.bf16.msra.mxu0 %v6476_v39 }
 0x2a0   : > { %6029 = vmatpush3.bf16.msra.mxu1 %v6477_v40  ;;  %6006 = vmatprep.subr.bf16.mxu0 %v6478_v41  ;;  %v6513_v40 = vld [vmem:[%s7737_s8 + $0x10] sm:$0xff]  }
 0x2a1   : > { %6030 = vmatprep.subr.bf16.mxu1 %v6479_v42 }
 0x2a3   : > { %6007 = vmatpush3.bf16.msra.mxu0 %v6478_v41 }
 0x2a4   : > { %6031 = vmatpush3.bf16.msra.mxu1 %v6479_v42  ;;  %6008 = vmatprep.subr.bf16.mxu0 %v6480_v43 }
 0x2a5   : > { %6032 = vmatprep.subr.bf16.mxu1 %v6481_v44 }
 0x2a7   : > { %6009 = vmatpush3.bf16.msra.mxu0 %v6480_v43 }
 0x2a8   : > { %6033 = vmatpush3.bf16.msra.mxu1 %v6481_v44  ;;  %6010 = vmatprep.subr.bf16.mxu0 %v6482_v51  ;;  %v6514_v44 = vld [vmem:[%s7737_s8 + $0x8] sm:$0xff]  }
 0x2a9   : > { %6058 = vmatprep.subr.bf16.mxu1 %v6483_v55 }
 0x2ab   : > { %6011 = vmatpush3.bf16.msra.mxu0 %v6482_v51  ;;  %6035 = vmatmul.mubr.bf16.vlgmr.msra.gmra.mxu1 %v2665_v49  ;;  %v2791_v49 = vsel %vm2786_vm6, %v2788_v9, %v2790_v21  ;;  %v6504_v9 = vld [vmem:[%s7736_s7 + $0x218] sm:$0xff]  }
 0x2ac   : > { %6059 = vmatpush3.bf16.msra.mxu1 %v6483_v55  ;;  %6074 = vmatprep.mubr.bf16.mxu1 %v2917_v61 }
 0x2ad   : > { %6012 = vmatprep.subr.bf16.mxu0 %v6484_v57  ;;  %6060 = vmatprep.subr.bf16.mxu1 %v6485_v59 }
 0x2af   : > { %6013 = vmatpush3.bf16.msra.mxu0 %v6484_v57 }
 0x2b0   : > { %6061 = vmatpush3.bf16.msra.mxu1 %v6485_v59  ;;  %6038 = vmatprep.subr.bf16.mxu0 %v6486_v62 }
 0x2b1   : > { %6062 = vmatprep.subr.bf16.mxu1 %v6487_v0 }
 0x2b2   : > { %6015 = vmatmul.mubr.bf16.vlgmr.msra.gmra.mxu0 %v7222_v34 }
 0x2b3   : > { %6039 = vmatpush3.bf16.msra.mxu0 %v6486_v62  ;;  %6054 = vmatprep.mubr.bf16.mxu0 %v7162_v11  ;;  %v2922_v11 = vshll.u32 %v7306_v7, 16 }
 0x2b4   : > { %6063 = vmatpush3.bf16.msra.mxu1 %v6487_v0  ;;  %6040 = vmatprep.subr.bf16.mxu0 %v6488_v1 }
 0x2b5   : > { %6064 = vmatprep.subr.bf16.mxu1 %v6489_v32  ;;  %v2924_v15 = vrot.slane %v2922_v11, 7 }
 0x2b7   : > { %6041 = vmatpush3.bf16.msra.mxu0 %v6488_v1  ;;  %v2925_v17 = vor.u32 %v2924_v15, %v2921_v14 }
 0x2b8   : > { %6065 = vmatpush3.bf16.msra.mxu1 %v6489_v32  ;;  %6042 = vmatprep.subr.bf16.mxu0 %v6490_v52 }
 0x2b9   : > { %6066 = vmatprep.subr.bf16.mxu1 %v6491_v2  ;;  %v2926_v19 = vsel %vm2910_vm9, %v7268_v60, %v2925_v17 }
 0x2bb   : > { %6043 = vmatpush3.bf16.msra.mxu0 %v6490_v52 }
 0x2bc   : > { %6067 = vmatpush3.bf16.msra.mxu1 %v6491_v2  ;;  %6044 = vmatprep.subr.bf16.mxu0 %v6492_v5 }
 0x2bd   : > { %6068 = vmatprep.subr.bf16.mxu1 %v6493_v6 }
 0x2bf   : > { %6045 = vmatpush3.bf16.msra.mxu0 %v6492_v5 }
 0x2c0   : > { %6069 = vmatpush3.bf16.msra.mxu1 %v6493_v6  ;;  %6046 = vmatprep.subr.bf16.mxu0 %v6494_v8 }
 0x2c1   : > { %6070 = vmatprep.subr.bf16.mxu1 %v6495_v10 }
 0x2c3   : > { %6047 = vmatpush3.bf16.msra.mxu0 %v6494_v8 }
 0x2c4   : > { %6071 = vmatpush3.bf16.msra.mxu1 %v6495_v10  ;;  %6048 = vmatprep.subr.bf16.mxu0 %v6496_v12 }
 0x2c5   : > { %6072 = vmatprep.subr.bf16.mxu1 %v6497_v54 }
 0x2c7   : > { %6049 = vmatpush3.bf16.msra.mxu0 %v6496_v12 }
 0x2c8   : > { %6073 = vmatpush3.bf16.msra.mxu1 %v6497_v54  ;;  %6050 = vmatprep.subr.bf16.mxu0 %v6498_v16 }
 0x2c9   : > { %6098 = vmatprep.subr.bf16.mxu1 %v6508_v29 }
 0x2cb   : > { %6051 = vmatpush3.bf16.msra.mxu0 %v6498_v16  ;;  %6075 = vmatmul.mubr.bf16.vlgmr.msra.gmra.mxu1 %v2926_v19 }
 0x2cc   : > { %6052 = vmatprep.subr.bf16.mxu0 %v6499_v18  ;;  %6099 = vmatpush3.bf16.msra.mxu1 %v6508_v29 }
 0x2cd   : > { %6100 = vmatprep.subr.bf16.mxu1 %v6509_v30 }
 0x2cf   : > { %6053 = vmatpush3.bf16.msra.mxu0 %v6499_v18 }
 0x2d0   : > { %6078 = vmatprep.subr.bf16.mxu0 %v6500_v20  ;;  %6101 = vmatpush3.bf16.msra.mxu1 %v6509_v30 }
 0x2d1   : > { %6102 = vmatprep.subr.bf16.mxu1 %v6510_v31 }
 0x2d2   : > { %6055 = vmatmul.mubr.bf16.vlgmr.msra.gmra.mxu0 %v2791_v49 }
 0x2d3   : > { %6079 = vmatpush3.bf16.msra.mxu0 %v6500_v20  ;;  %6094 = vmatprep.mubr.bf16.mxu0 %v7170_v13  ;;  %v6505_v13 = vld [vmem:[%s7736_s7 + $0x210] sm:$0xff]  }
 0x2d4   : > { %6080 = vmatprep.subr.bf16.mxu0 %v6501_v63  ;;  %6103 = vmatpush3.bf16.msra.mxu1 %v6510_v31 }
 0x2d5   : > { %6104 = vmatprep.subr.bf16.mxu1 %v6511_v48 }
 0x2d7   : > { %6081 = vmatpush3.bf16.msra.mxu0 %v6501_v63 }
 0x2d8   : > { %6082 = vmatprep.subr.bf16.mxu0 %v6502_v22  ;;  %6105 = vmatpush3.bf16.msra.mxu1 %v6511_v48 }
 0x2d9   : > { %6106 = vmatprep.subr.bf16.mxu1 %v6512_v3 }
 0x2db   : > { %6083 = vmatpush3.bf16.msra.mxu0 %v6502_v22 }
 0x2dc   : > { %6084 = vmatprep.subr.bf16.mxu0 %v6503_v23  ;;  %6107 = vmatpush3.bf16.msra.mxu1 %v6512_v3 }
 0x2dd   : > { %6108 = vmatprep.subr.bf16.mxu1 %v6513_v40 }
 0x2df   : > { %6085 = vmatpush3.bf16.msra.mxu0 %v6503_v23 }
 0x2e0   : > { %6086 = vmatprep.subr.bf16.mxu0 %v6504_v9  ;;  %6109 = vmatpush3.bf16.msra.mxu1 %v6513_v40  ;;  %v6520_v40 = vld [vmem:[%s7736_s7 + $0x2b0] sm:$0xff]  }
 0x2e1   : > { %6110 = vmatprep.subr.bf16.mxu1 %v6514_v44 }
 0x2e3   : > { %6087 = vmatpush3.bf16.msra.mxu0 %v6504_v9 }
 0x2e4   : > { %6088 = vmatprep.subr.bf16.mxu0 %v6505_v13  ;;  %6111 = vmatpush3.bf16.msra.mxu1 %v6514_v44  ;;  %v6524_v44 = vld [vmem:[%s7736_s7 + $0x2a0] sm:$0xff]  }
 0x2e5   : > { %6112 = vmatprep.subr.bf16.mxu1 %v6515_v45 }
 0x2e7   : > { %6089 = vmatpush3.bf16.msra.mxu0 %v6505_v13 }
 0x2e8   : > { %6090 = vmatprep.subr.bf16.mxu0 %v6506_v24  ;;  %6113 = vmatpush3.bf16.msra.mxu1 %v6515_v45  ;;  %v6525_v45 = vld [vmem:[%s7736_s7 + $0x250] sm:$0xff]  }
 0x2e9   : > { %6138 = vmatprep.subr.bf16.mxu1 %v6516_v46 }
 0x2eb   : > { %6091 = vmatpush3.bf16.msra.mxu0 %v6506_v24 }
 0x2ec   : > { %6092 = vmatprep.subr.bf16.mxu0 %v6507_v25 }
 0x2ef   : > { %6093 = vmatpush3.bf16.msra.mxu0 %v6507_v25 }
 0x2f0   : > { %6118 = vmatprep.subr.bf16.mxu0 %v6518_v47 }
 0x2f2   : > { %6095 = vmatmul.mubr.bf16.vlgmr.msra.gmra.mxu0 %v3050_v28 }
 0x2f3   : > { %6119 = vmatpush3.bf16.msra.mxu0 %v6518_v47  ;;  %v6527_v47 = vld [vmem:[%s7736_s7 + $0x248] sm:$0xff]  }
 0x2f4   : > { %6120 = vmatprep.subr.bf16.mxu0 %v6520_v40 }
 0x2f7   : > { %6121 = vmatpush3.bf16.msra.mxu0 %v6520_v40  ;;  %v6538_v40 = vld [vmem:[%s7736_s7 + $0x2e8] sm:$0xff]  }
 0x32b   : > { %v5956_v33 = vpop.f32.mrf.mxu1 }
 0x32d   : > { %v2263_v34 = vpop.f32.mrf.mxu1 }
 0x32f   : > { %v5957_v35 = vpop.f32.mrf.mxu1 }
 0x331   : > { %v2266_v41 = vpop.f32.mrf.mxu1 }
 0x332   : > { %v5936_v36 = vpop.f32.mrf.mxu0 }
 0x333   : > { %v2272_v37 = vadd.f32 %v5956_v33, %v5936_v36 }
 0x334   : > { %v2167_v53 = vpop.f32.mrf.mxu0 }
 0x335   : > { %v2264_v38 = vadd.f32 %v2263_v34, %v2167_v53 }
 0x336   : > { %v5937_v39 = vpop.f32.mrf.mxu0 }
 0x337   : > { %v6519_v39 = vld [vmem:[%s7736_s7 + $0x268] sm:$0xff]  }
 0x338   : > { %v2170_v42 = vpop.f32.mrf.mxu0 }
 0x339   : > { %v2267_v43 = vadd.f32 %v2266_v41, %v2170_v42  ;;  %v6521_v41 = vld [vmem:[%s7736_s7 + $0x260] sm:$0xff]   ;;  %v6522_v42 = vld [vmem:[%s7736_s7 + $0x2a8] sm:$0xff]  }
 0x33a   : > { %6122 = vmatprep.subr.bf16.mxu0 %v6522_v42 }
 0x33b   : > { %6123 = vmatpush3.bf16.msra.mxu0 %v6522_v42  ;;  %v6539_v42 = vld [vmem:[%s7736_s7 + $0x318] sm:$0xff]  }
 0x33c   : > { %6124 = vmatprep.subr.bf16.mxu0 %v6524_v44 }
 0x33f   : > { %6125 = vmatpush3.bf16.msra.mxu0 %v6524_v44  ;;  %v6541_v44 = vld [vmem:[%s7736_s7 + $0x310] sm:$0xff]  }
 0x34b   : > { %v5996_v50 = vpop.f32.mrf.mxu1 }
 0x34d   : > { %v2504_v51 = vpop.f32.mrf.mxu1 }
 0x34f   : > { %v5997_v55 = vpop.f32.mrf.mxu1 }
 0x350   : > { %v6530_v55 = vld [vmem:[%s7736_s7 + $0x288] sm:$0xff]  }
 0x351   : > { %v2507_v58 = vpop.f32.mrf.mxu1 }
 0x352   : > { %v5976_v56 = vpop.f32.mrf.mxu0 }
 0x353   : > { %v2399_v60 = vadd.f32 %v5976_v56, %v2272_v37  ;;  %v6531_v56 = vld [vmem:[%s7736_s7 + $0x338] sm:$0xff]  }
 0x354   : > { %v2383_v57 = vpop.f32.mrf.mxu0 }
 0x355   : > { %v2397_v59 = vadd.f32 %v2383_v57, %v2264_v38  ;;  %v2520_v61 = vadd.f32 %v5996_v50, %v2399_v60  ;;  %v6517_v38 = vld [vmem:[%s7736_s7 + $0x270] sm:$0xff]   ;;  %v6532_v60 = vld [vmem:[%s7736_s7 + $0x280] sm:$0xff]   ;;  %v7441_v57 = vld [vmem:[%s7736_s7 + $0x2f8] sm:$0xff]  }
 0x356   : > { %v5977_v62 = vpop.f32.mrf.mxu0  ;;  %v6528_v50 = vld [vmem:[%s7736_s7 + $0x290] sm:$0xff]  }
 0x357   : > { %v2518_v0 = vadd.f32 %v2504_v51, %v2397_v59  ;;  %v6529_v51 = vld [vmem:[%s7736_s7 + $0x240] sm:$0xff]   ;;  %v3281_v59 = vpop.permute.xlu0 %3280  ;;  %v3271_v62 = vld [vmem:[#allocation3 + $0x17] sm:$0xff] }
 0x358   : > { %v2386_v1 = vpop.f32.mrf.mxu0 }
 0x359   : > { %v2398_v32 = vadd.f32 %v2386_v1, %v2267_v43  ;;  %v6523_v43 = vld [vmem:[%s7736_s7 + $0x258] sm:$0xff]  }
 0x35b   : > { %v2519_v52 = vadd.f32 %v2507_v58, %v2398_v32  ;;  %v3291_v1 = vpop.permute.xlu0 %3290  ;;  %v3269_v58 = vld [vmem:[#allocation3 + $0x7] sm:$0xff] }
 0x36b   : > { %v6036_v2 = vpop.f32.mrf.mxu1 }
 0x36d   : > { %v2751_v4 = vpop.f32.mrf.mxu1 }
 0x36f   : > { %v6037_v5 = vpop.f32.mrf.mxu1 }
 0x371   : > { %v2754_v54 = vpop.f32.mrf.mxu1 }
 0x372   : > { %v6016_v6 = vpop.f32.mrf.mxu0 }
 0x373   : > { %v2645_v7 = vadd.f32 %v6016_v6, %v2520_v61 }
 0x374   : > { %v2629_v8 = vpop.f32.mrf.mxu0 }
 0x375   : > { %v2643_v10 = vadd.f32 %v2629_v8, %v2518_v0  ;;  %v2767_v26 = vadd.f32 %v6036_v2, %v2645_v7  ;;  %v3270_v7 = vld [vmem:[#allocation3 + $0xf] sm:$0xff] }
 0x376   : > { %v6017_v11 = vpop.f32.mrf.mxu0 }
 0x377   : > { %v2765_v12 = vadd.f32 %v2751_v4, %v2643_v10  ;;  %v3286_v10 = vpop.permute.xlu1 %3285 }
 0x378   : > { %v2632_v17 = vpop.f32.mrf.mxu0 }
 0x379   : > { %v2644_v21 = vadd.f32 %v2632_v17, %v2519_v52 }
 0x37b   : > { %v2766_v23 = vadd.f32 %v2754_v54, %v2644_v21  ;;  %v6533_v21 = vld [vmem:[%s7736_s7 + $0x330] sm:$0xff]  }
 0x38b   : > { %v6076_v14 = vpop.f32.mrf.mxu1 }
 0x38d   : > { %v3011_v15 = vpop.f32.mrf.mxu1 }
 0x38f   : > { %v6077_v16 = vpop.f32.mrf.mxu1 }
 0x391   : > { %v3014_v28 = vpop.f32.mrf.mxu1 }
 0x392   : > { %v6056_v18 = vpop.f32.mrf.mxu0 }
 0x393   : > { %v2892_v63 = vadd.f32 %v6056_v18, %v2767_v26 }
 0x394   : > { %v2876_v19 = vpop.f32.mrf.mxu0 }
 0x395   : > { %v2890_v22 = vadd.f32 %v2876_v19, %v2765_v12  ;;  %v3027_v24 = vadd.f32 %v6076_v14, %v2892_v63 }
 0x396   : > { %v6057_v20 = vpop.f32.mrf.mxu0 }
 0x397   : > { %v3025_v27 = vadd.f32 %v3011_v15, %v2890_v22 }
 0x398   : > { %v2879_v49 = vpop.f32.mrf.mxu0 }
 0x399   : > { %v2891_v13 = vadd.f32 %v2879_v49, %v2766_v23 }
 0x39b   : > { %v3026_v48 = vadd.f32 %v3014_v28, %v2891_v13 }
 0x3b2   : > { %v6096_v9 = vpop.f32.mrf.mxu0 }
 0x3b3   : > { %v3151_v29 = vadd.f32 %v6096_v9, %v3027_v24 }
 0x3b4   : > { %v3135_v25 = vpop.f32.mrf.mxu0 }
 0x3b5   : > { %v3149_v31 = vadd.f32 %v3135_v25, %v3025_v27  ;;  %v3154_v34 = vmax.f32 %v3151_v29, 0.0  ;;  %v6535_v27 = vld [vmem:[%s7736_s7 + $0x328] sm:$0xff]  }
 0x3b6   : > { %v6097_v30 = vpop.f32.mrf.mxu0 }
 0x3b7   : > { %v3152_v35 = vmax.f32 %v3149_v31, 0.0  ;;  %v3156_v53 = vpack.c.bf16 %v3154_v34, %v3154_v34  ;;  %v6537_v34 = vld [vmem:[%s7736_s7 + $0x320] sm:$0xff]  }
 0x3b8   : > { %v3138_v3 = vpop.f32.mrf.mxu0 }
 0x3b9   : > { %v3150_v33 = vadd.f32 %v3138_v3, %v3026_v48 }
 0x3bb   : > { %v3153_v36 = vmax.f32 %v3150_v33, 0.0  ;;  %v6536_v33 = vld [vmem:[%s7736_s7 + $0x2f0] sm:$0xff]  }
 0x3bd   : > { %v3155_v37 = vpack.c.bf16 %v3153_v36, %v3152_v35 }
 0x3bf   : > { %6114 = vmatprep.mubr.bf16.mxu1 %v3155_v37 }
 0x3c0   : > { %6115 = vmatmul.mubr.bf16.vlgmr.msra.gmra.mxu1 %v3156_v53 }
 0x3c1   : > { %6139 = vmatpush3.bf16.msra.mxu1 %v6516_v46  ;;  %v6526_v46 = vld [vmem:[%s7736_s7 + $0x298] sm:$0xff]  }
 0x3c2   : > { %6140 = vmatprep.subr.bf16.mxu1 %v6517_v38  ;;  %6126 = vmatprep.subr.bf16.mxu0 %v6526_v46 }
 0x3c3   : > { %6127 = vmatpush3.bf16.msra.mxu0 %v6526_v46  ;;  %v6543_v46 = vld [vmem:[%s7736_s7 + $0x308] sm:$0xff]  }
 0x3c4   : > { %6128 = vmatprep.subr.bf16.mxu0 %v6528_v50 }
 0x3c5   : > { %6141 = vmatpush3.bf16.msra.mxu1 %v6517_v38 }
 0x3c6   : > { %6142 = vmatprep.subr.bf16.mxu1 %v6519_v39 }
 0x3c7   : > { %6129 = vmatpush3.bf16.msra.mxu0 %v6528_v50  ;;  %v6545_v50 = vld [vmem:[%s7736_s7 + $0x300] sm:$0xff]  }
 0x3c8   : > { %6130 = vmatprep.subr.bf16.mxu0 %v6530_v55 }
 0x3c9   : > { %6143 = vmatpush3.bf16.msra.mxu1 %v6519_v39 }
 0x3ca   : > { %6144 = vmatprep.subr.bf16.mxu1 %v6521_v41 }
 0x3cb   : > { %6131 = vmatpush3.bf16.msra.mxu0 %v6530_v55  ;;  %v6547_v55 = vld [vmem:[%s7736_s7 + $0x3b8] sm:$0xff]  }
 0x3cc   : > { %6132 = vmatprep.subr.bf16.mxu0 %v6532_v60 }
 0x3cd   : > { %6145 = vmatpush3.bf16.msra.mxu1 %v6521_v41 }
 0x3ce   : > { %6146 = vmatprep.subr.bf16.mxu1 %v6523_v43 }
 0x3cf   : > { %6133 = vmatpush3.bf16.msra.mxu0 %v6532_v60 }
 0x3d0   : > { %6158 = vmatprep.subr.bf16.mxu0 %v7441_v57 }
 0x3d1   : > { %6147 = vmatpush3.bf16.msra.mxu1 %v6523_v43  ;;  %v6540_v43 = vld [vmem:[%s7736_s7 + $0x2e0] sm:$0xff]  }
 0x3d2   : > { %6148 = vmatprep.subr.bf16.mxu1 %v6525_v45 }
 0x3d5   : > { %6149 = vmatpush3.bf16.msra.mxu1 %v6525_v45  ;;  %v6542_v45 = vld [vmem:[%s7736_s7 + $0x2d8] sm:$0xff]  }
 0x3d6   : > { %6150 = vmatprep.subr.bf16.mxu1 %v6527_v47 }
 0x3d9   : > { %6151 = vmatpush3.bf16.msra.mxu1 %v6527_v47  ;;  %v6544_v47 = vld [vmem:[%s7736_s7 + $0x2d0] sm:$0xff]  }
 0x3da   : > { %6152 = vmatprep.subr.bf16.mxu1 %v6529_v51 }
 0x3dd   : > { %6153 = vmatpush3.bf16.msra.mxu1 %v6529_v51  ;;  %v6546_v51 = vld [vmem:[%s7736_s7 + $0x2c8] sm:$0xff]  }
 0x3de   : > { %6178 = vmatprep.subr.bf16.mxu1 %v6531_v56 }
 0x480   : > { %v6116_v61 = vpop.f32.mrf.mxu1 }
 0x481   : > { %v3274_v0 = vadd.f32 %v6116_v61, %v3271_v62 }
 0x482   : > { %v3255_v32 = vpop.f32.mrf.mxu1 }
 0x483   : > { %v3295_v52 = vmul.f32 %v3291_v1, %v3274_v0  ;;  %v3272_v2 = vadd.f32 %v3269_v58, %v3255_v32  ;;  %v6550_v58 = vld [vmem:[%s7736_s7 + $0x378] sm:$0xff]  }
 0x484   : > { %v6117_v4 = vpop.f32.mrf.mxu1 }
 0x485   : > { %3298 = vst [vmem:[#allocation3 + $0x17] sm:$0xff] %v3295_v52  ;;  %v3293_v5 = vmul.f32 %v3281_v59, %v3272_v2  ;;  %v6549_v59 = vld [vmem:[%s7736_s7 + $0x3b0] sm:$0xff]   ;;  %v6551_v52 = vld [vmem:[%s7736_s7 + $0x3a8] sm:$0xff]  }
 0x486   : > { %v3258_v6 = vpop.f32.mrf.mxu1 }
 0x487   : > { %3296 = vst [vmem:[#allocation3 + $0x7] sm:$0xff] %v3293_v5  ;;  %v3273_v8 = vadd.f32 %v3270_v7, %v3258_v6  ;;  %v6552_v5 = vld [vmem:[%s7736_s7 + $0x370] sm:$0xff]   ;;  %v6553_v6 = vld [vmem:[%s7736_s7 + $0x3a0] sm:$0xff]  }
 0x489   : > { %v3294_v26 = vmul.f32 %v3286_v10, %v3273_v8  ;;  %v6554_v8 = vld [vmem:[%s7736_s7 + $0x368] sm:$0xff]   ;;  %v6555_v10 = vld [vmem:[%s7736_s7 + $0x398] sm:$0xff]  }
 0x48b   : > { %3297 = vst [vmem:[#allocation3 + $0xf] sm:$0xff] %v3294_v26  ;;  %v6556_v26 = vld [vmem:[%s7736_s7 + $0x360] sm:$0xff]  }
 0x48c   : > { %v3302_v12 = vld [vmem:[#allocation3 + $0x18] sm:$0xff] }
 0x48d   : > { %v3307_v18 = vmax.f32 %v3302_v12, 0.0  ;;  %v6558_v12 = vld [vmem:[%s7736_s7 + $0x358] sm:$0xff]  }
 0x48e   : > { %v3299_v11 = vld [vmem:[#allocation3] sm:$0xff] }
 0x48f   : > { %v3304_v15 = vmax.f32 %v3299_v11, 0.0  ;;  %v6557_v11 = vld [vmem:[%s7736_s7 + $0x390] sm:$0xff]  }
 0x492   : > { %v3300_v54 = vld [vmem:[#allocation3 + $0x8] sm:$0xff]  ;;  %v3301_v14 = vld [vmem:[#allocation3 + $0x10] sm:$0xff] }
 0x493   : > { %v3305_v16 = vmax.f32 %v3300_v54, 0.0  ;;  %v3306_v17 = vmax.f32 %v3301_v14, 0.0  ;;  %v6559_v54 = vld [vmem:[%s7736_s7 + $0x388] sm:$0xff]   ;;  %v6560_v14 = vld [vmem:[%s7736_s7 + $0x350] sm:$0xff]  }
 0x495   : > { %v7444_v19 = vpack.c.bf16 %v3305_v16, %v3304_v15  ;;  %v7446_v20 = vpack.c.bf16 %v3307_v18, %v3306_v17  ;;  %v6561_v15 = vld [vmem:[%s7736_s7 + $0x380] sm:$0xff]  }
 0x497   : > { %6154 = vmatprep.mubr.bf16.mxu1 %v7444_v19  ;;  %v3695_v63 = vrot.slane %v7444_v19, 3  ;;  %v3696_v49 = vrot.slane %v7446_v20, 3  ;;  %v7455_v22 = vshll.u32 %v7444_v19, 16  ;;  %v7459_v23 = vshll.u32 %v7446_v20, 16 }
 0x498   : > { %6155 = vmatmul.mubr.bf16.vlgmr.msra.gmra.mxu1 %v7446_v20  ;;  %v7465_v13 = vshrl.u32 %v7444_v19, 16  ;;  %v7474_v29 = vshrl.u32 %v7446_v20, 16  ;;  %v3574_v30 = vrot.slane %v7444_v19, 1  ;;  %v3575_v31 = vrot.slane %v7446_v20, 1 }
 0x499   : > { %6179 = vmatpush3.bf16.msra.mxu1 %v6531_v56  ;;  %v3697_v9 = vsel %vm808_vm0, %v3695_v63, %v3696_v49  ;;  %v3351_v24 = vrot.slane %v7455_v22, 1  ;;  %v3356_v25 = vrot.slane %v7459_v23, 1  ;;  %v4063_v35 = vrot.slane %v7444_v19, 6  ;;  %v6563_v63 = vld [vmem:[%s7736_s7 + $0x438] sm:$0xff]  }
 0x49a   : > { %6194 = vmatprep.mubr.bf16.mxu1 %v3697_v9  ;;  %6180 = vmatprep.subr.bf16.mxu1 %v6533_v21  ;;  %v4064_v36 = vrot.slane %v7446_v20, 6  ;;  %v4320_v37 = vrot.slane %v7444_v19, 7  ;;  %v3576_v53 = vsel %vm1331_vm5, %v3574_v30, %v3575_v31  ;;  %v4321_v38 = vrot.slane %v7446_v20, 7  ;;  %v6570_v30 = vld [vmem:[%s7736_s7 + $0x3e8] sm:$0xff]  }
 0x49b   : > { %v3352_v28 = vor.u32 %v3351_v24, %v7465_v13  ;;  %v3360_v3 = vor.u32 %v7474_v29, %v3356_v25  ;;  %v3941_v56 = vrot.slane %v7444_v19, 4  ;;  %v3942_v60 = vrot.slane %v7446_v20, 4  ;;  %v6566_v24 = vld [vmem:[%s7736_s7 + $0x3f8] sm:$0xff]   ;;  %v6591_v20 = vld [vmem:[%s7737_s8 + $0x60] sm:$0xff]  }
 0x49c   : > { %v7497_v39 = vsel %vm2786_vm6, %v4063_v35, %v4064_v36  ;;  %v7505_v41 = vsel %vm3045_vm7, %v4320_v37, %v4321_v38  ;;  %v3816_v61 = vrot.slane %v7465_v13, 3  ;;  %v3817_v62 = vrot.slane %v7455_v22, 4  ;;  %v6574_v35 = vld [vmem:[%s7736_s7 + $0x3d8] sm:$0xff]   ;;  %v6575_v37 = vld [vmem:[%s7736_s7 + $0x408] sm:$0xff]  }
 0x49d   : > { %6181 = vmatpush3.bf16.msra.mxu1 %v6533_v21  ;;  %v3357_v48 = vsel %vm1047_vm1, %v3352_v28, %v3356_v25  ;;  %v3819_v0 = vrot.slane %v7474_v29, 3  ;;  %v3820_v1 = vrot.slane %v7459_v23, 4  ;;  %v3943_v32 = vsel %vm2663_vm8, %v3941_v56, %v3942_v60  ;;  %v6562_v21 = vld [vmem:[%s7736_s7 + $0x348] sm:$0xff]   ;;  %v6569_v28 = vld [vmem:[%s7736_s7 + $0x420] sm:$0xff]   ;;  %v6581_v56 = vld [vmem:[%s7736_s7 + $0x470] sm:$0xff]  }
 0x49e   : > { %6134 = vmatprep.mubr.bf16.mxu0 %v3357_v48  ;;  %6182 = vmatprep.subr.bf16.mxu1 %v6535_v27  ;;  %v3818_v2 = vor.u32 %v3817_v62, %v3816_v61  ;;  %v4186_v16 = vrot.slane %v7465_v13, 6  ;;  %v4187_v17 = vrot.slane %v7455_v22, 7  ;;  %v4189_v18 = vrot.slane %v7474_v29, 6  ;;  %v6564_v22 = vld [vmem:[%s7736_s7 + $0x340] sm:$0xff]   ;;  %v6567_v25 = vld [vmem:[%s7736_s7 + $0x428] sm:$0xff]  }
 0x49f   : > { %6135 = vmatmul.mubr.bf16.vlgmr.msra.gmra.mxu0 %v3360_v3  ;;  %v7557_v4 = vor.u32 %v3820_v1, %v3819_v0  ;;  %v4190_v19 = vrot.slane %v7459_v23, 7  ;;  %v6565_v23 = vld [vmem:[%s7736_s7 + $0x430] sm:$0xff]   ;;  %v3303_v29 = vld [vmem:[#allocation3 + $0x20] sm:$0x3f]  ;;  %v6586_v61 = vld [vmem:[%s7736_s7 + $0x448] sm:$0xff]  }
 0x4a0   : > { %6159 = vmatpush3.bf16.msra.mxu0 %v7441_v57  ;;  %6174 = vmatprep.mubr.bf16.mxu0 %v3576_v53  ;;  %v6548_v57 = vld [vmem:[%s7736_s7 + $0x2c0] sm:$0xff]   ;;  %v3308_v48 = vmax.f32 %v3303_v29, 0.0 }
 0x4a1   : > { %6183 = vmatpush3.bf16.msra.mxu1 %v6535_v27  ;;  %6160 = vmatprep.subr.bf16.mxu0 %v6536_v33  ;;  %v3822_v7 = vsel %vm1861_vm2, %v3818_v2, %v7557_v4  ;;  %v7603_v9 = vor.u32 %v4190_v19, %v4189_v18  ;;  %v6568_v27 = vld [vmem:[%s7736_s7 + $0x3f0] sm:$0xff]   ;;  %v6572_v3 = vld [vmem:[%s7736_s7 + $0x3e0] sm:$0xff]  }
 0x4a2   : > { %6184 = vmatprep.subr.bf16.mxu1 %v6537_v34  ;;  %v6587_v62 = vld [vmem:[%s7736_s7 + $0x440] sm:$0xff]  }
 0x4a4   : > { %6161 = vmatpush3.bf16.msra.mxu0 %v6536_v33  ;;  %v6573_v33 = vld [vmem:[%s7736_s7 + $0x410] sm:$0xff]  }
 0x4a5   : > { %6185 = vmatpush3.bf16.msra.mxu1 %v6537_v34  ;;  %6162 = vmatprep.subr.bf16.mxu0 %v6538_v40  ;;  %v7641_v34 = vpack.c.bf16 %v3308_v48, %v3308_v48 }
 0x4a6   : > { %6186 = vmatprep.subr.bf16.mxu1 %v6539_v42 }
 0x4a7   : > { %v4194_v53 = vshrl.u32 %v7641_v34, 16  ;;  %v4323_v0 = vrot.slane %v7641_v34, 7 }
 0x4a8   : > { %6163 = vmatpush3.bf16.msra.mxu0 %v6538_v40  ;;  %v6576_v40 = vld [vmem:[%s7736_s7 + $0x3d0] sm:$0xff]  }
 0x4a9   : > { %6187 = vmatpush3.bf16.msra.mxu1 %v6539_v42  ;;  %6164 = vmatprep.subr.bf16.mxu0 %v6540_v43  ;;  %v6577_v42 = vld [vmem:[%s7736_s7 + $0x400] sm:$0xff]   ;;  %v4324_v1 = vsel %vm3045_vm7, %v4321_v38, %v4323_v0  ;;  %v6592_v38 = vld [vmem:[%s7737_s8 + $0x58] sm:$0xff]  }
 0x4aa   : > { %6188 = vmatprep.subr.bf16.mxu1 %v6541_v44 }
 0x4ac   : > { %6165 = vmatpush3.bf16.msra.mxu0 %v6540_v43  ;;  %v4196_v43 = vrot.slane %v4194_v53, 6 }
 0x4ad   : > { %6189 = vmatpush3.bf16.msra.mxu1 %v6541_v44  ;;  %6166 = vmatprep.subr.bf16.mxu0 %v6542_v45 }
 0x4ae   : > { %6190 = vmatprep.subr.bf16.mxu1 %v6543_v46 }
 0x4b0   : > { %6167 = vmatpush3.bf16.msra.mxu0 %v6542_v45  ;;  %v6578_v45 = vld [vmem:[%s7736_s7 + $0x3c8] sm:$0xff]  }
 0x4b1   : > { %6191 = vmatpush3.bf16.msra.mxu1 %v6543_v46  ;;  %6168 = vmatprep.subr.bf16.mxu0 %v6544_v47 }
 0x4b2   : > { %6192 = vmatprep.subr.bf16.mxu1 %v6545_v50 }
 0x4b4   : > { %6169 = vmatpush3.bf16.msra.mxu0 %v6544_v47  ;;  %v6579_v47 = vld [vmem:[%s7736_s7 + $0x3c0] sm:$0xff]  }
 0x4b5   : > { %6193 = vmatpush3.bf16.msra.mxu1 %v6545_v50  ;;  %6170 = vmatprep.subr.bf16.mxu0 %v6546_v51 }
 0x4b6   : > { %6218 = vmatprep.subr.bf16.mxu1 %v6547_v55 }
 0x4b8   : > { %6171 = vmatpush3.bf16.msra.mxu0 %v6546_v51  ;;  %6195 = vmatmul.mubr.bf16.vlgmr.msra.gmra.mxu1 %v3696_v49  ;;  %v4188_v49 = vor.u32 %v4187_v17, %v4186_v16  ;;  %v6580_v51 = vld [vmem:[%s7736_s7 + $0x478] sm:$0xff]   ;;  %v6595_v16 = vld [vmem:[%s7737_s8 + $0x40] sm:$0xff]  }
 0x4b9   : > { %6219 = vmatpush3.bf16.msra.mxu1 %v6547_v55  ;;  %6234 = vmatprep.mubr.bf16.mxu1 %v3943_v32  ;;  %v4066_v55 = vrot.slane %v7641_v34, 6  ;;  %v6588_v32 = vld [vmem:[%s7737_s8 + $0x78] sm:$0xff]  }
 0x4ba   : > { %6172 = vmatprep.subr.bf16.mxu0 %v6548_v57  ;;  %6220 = vmatprep.subr.bf16.mxu1 %v6549_v59  ;;  %v4192_v13 = vsel %vm2910_vm9, %v4188_v49, %v7603_v9 }
 0x4bc   : > { %6173 = vmatpush3.bf16.msra.mxu0 %v6548_v57  ;;  %v6582_v57 = vld [vmem:[%s7736_s7 + $0x468] sm:$0xff]  }
 0x4bd   : > { %6221 = vmatpush3.bf16.msra.mxu1 %v6549_v59  ;;  %6198 = vmatprep.subr.bf16.mxu0 %v6550_v58  ;;  %v6583_v59 = vld [vmem:[%s7736_s7 + $0x460] sm:$0xff]  }
 0x4be   : > { %6222 = vmatprep.subr.bf16.mxu1 %v6551_v52 }
 0x4bf   : > { %6175 = vmatmul.mubr.bf16.vlgmr.msra.gmra.mxu0 %v3575_v31  ;;  %v6571_v31 = vld [vmem:[%s7736_s7 + $0x418] sm:$0xff]  }
 0x4c0   : > { %6199 = vmatpush3.bf16.msra.mxu0 %v6550_v58  ;;  %6214 = vmatprep.mubr.bf16.mxu0 %v3822_v7  ;;  %v6589_v58 = vld [vmem:[%s7737_s8 + $0x70] sm:$0xff]  }
 0x4c1   : > { %6223 = vmatpush3.bf16.msra.mxu1 %v6551_v52  ;;  %6200 = vmatprep.subr.bf16.mxu0 %v6552_v5  ;;  %v6590_v52 = vld [vmem:[%s7737_s8 + $0x68] sm:$0xff]  }
 0x4c2   : > { %6224 = vmatprep.subr.bf16.mxu1 %v6553_v6 }
 0x4c4   : > { %6201 = vmatpush3.bf16.msra.mxu0 %v6552_v5 }
 0x4c5   : > { %6225 = vmatpush3.bf16.msra.mxu1 %v6553_v6  ;;  %6202 = vmatprep.subr.bf16.mxu0 %v6554_v8 }
 0x4c6   : > { %6226 = vmatprep.subr.bf16.mxu1 %v6555_v10 }
 0x4c8   : > { %6203 = vmatpush3.bf16.msra.mxu0 %v6554_v8 }
 0x4c9   : > { %6227 = vmatpush3.bf16.msra.mxu1 %v6555_v10  ;;  %6204 = vmatprep.subr.bf16.mxu0 %v6556_v26 }
 0x4ca   : > { %6228 = vmatprep.subr.bf16.mxu1 %v6557_v11 }
 0x4cc   : > { %6205 = vmatpush3.bf16.msra.mxu0 %v6556_v26 }
 0x4cd   : > { %6229 = vmatpush3.bf16.msra.mxu1 %v6557_v11  ;;  %6206 = vmatprep.subr.bf16.mxu0 %v6558_v12  ;;  %v6593_v11 = vld [vmem:[%s7737_s8 + $0x50] sm:$0xff]  }
 0x4ce   : > { %6230 = vmatprep.subr.bf16.mxu1 %v6559_v54 }
 0x4d0   : > { %6207 = vmatpush3.bf16.msra.mxu0 %v6558_v12 }
 0x4d1   : > { %6231 = vmatpush3.bf16.msra.mxu1 %v6559_v54  ;;  %6208 = vmatprep.subr.bf16.mxu0 %v6560_v14 }
 0x4d2   : > { %6232 = vmatprep.subr.bf16.mxu1 %v6561_v15 }
 0x4d4   : > { %6209 = vmatpush3.bf16.msra.mxu0 %v6560_v14 }
 0x4d5   : > { %6233 = vmatpush3.bf16.msra.mxu1 %v6561_v15  ;;  %6210 = vmatprep.subr.bf16.mxu0 %v6562_v21  ;;  %v6594_v15 = vld [vmem:[%s7737_s8 + $0x48] sm:$0xff]  }
 0x4d6   : > { %6258 = vmatprep.subr.bf16.mxu1 %v6563_v63 }
 0x4d8   : > { %6211 = vmatpush3.bf16.msra.mxu0 %v6562_v21  ;;  %6235 = vmatmul.mubr.bf16.vlgmr.msra.gmra.mxu1 %v3942_v60  ;;  %v4067_v60 = vsel %vm2786_vm6, %v4064_v36, %v4066_v55  ;;  %v6584_v36 = vld [vmem:[%s7736_s7 + $0x458] sm:$0xff]  }
 0x4d9   : > { %6259 = vmatpush3.bf16.msra.mxu1 %v6563_v63  ;;  %6274 = vmatprep.mubr.bf16.mxu1 %v4192_v13 }
 0x4da   : > { %6212 = vmatprep.subr.bf16.mxu0 %v6564_v22  ;;  %6260 = vmatprep.subr.bf16.mxu1 %v6565_v23 }
 0x4dc   : > { %6213 = vmatpush3.bf16.msra.mxu0 %v6564_v22 }
 0x4dd   : > { %6261 = vmatpush3.bf16.msra.mxu1 %v6565_v23  ;;  %6238 = vmatprep.subr.bf16.mxu0 %v6566_v24 }
 0x4de   : > { %6262 = vmatprep.subr.bf16.mxu1 %v6567_v25 }
 0x4df   : > { %6215 = vmatmul.mubr.bf16.vlgmr.msra.gmra.mxu0 %v7557_v4 }
 0x4e0   : > { %6239 = vmatpush3.bf16.msra.mxu0 %v6566_v24  ;;  %6254 = vmatprep.mubr.bf16.mxu0 %v7497_v39  ;;  %v4197_v39 = vshll.u32 %v7641_v34, 16 }
 0x4e1   : > { %6263 = vmatpush3.bf16.msra.mxu1 %v6567_v25  ;;  %6240 = vmatprep.subr.bf16.mxu0 %v6568_v27 }
 0x4e2   : > { %6264 = vmatprep.subr.bf16.mxu1 %v6569_v28  ;;  %v4199_v44 = vrot.slane %v4197_v39, 7 }
 0x4e4   : > { %6241 = vmatpush3.bf16.msra.mxu0 %v6568_v27  ;;  %v4200_v46 = vor.u32 %v4199_v44, %v4196_v43 }
 0x4e5   : > { %6265 = vmatpush3.bf16.msra.mxu1 %v6569_v28  ;;  %6242 = vmatprep.subr.bf16.mxu0 %v6570_v30 }
 0x4e6   : > { %6266 = vmatprep.subr.bf16.mxu1 %v6571_v31  ;;  %v4201_v50 = vsel %vm2910_vm9, %v7603_v9, %v4200_v46 }
 0x4e8   : > { %6243 = vmatpush3.bf16.msra.mxu0 %v6570_v30 }
 0x4e9   : > { %6267 = vmatpush3.bf16.msra.mxu1 %v6571_v31  ;;  %6244 = vmatprep.subr.bf16.mxu0 %v6572_v3 }
 0x4ea   : > { %6268 = vmatprep.subr.bf16.mxu1 %v6573_v33 }
 0x4ec   : > { %6245 = vmatpush3.bf16.msra.mxu0 %v6572_v3 }
 0x4ed   : > { %6269 = vmatpush3.bf16.msra.mxu1 %v6573_v33  ;;  %6246 = vmatprep.subr.bf16.mxu0 %v6574_v35 }
 0x4ee   : > { %6270 = vmatprep.subr.bf16.mxu1 %v6575_v37 }
 0x4f0   : > { %6247 = vmatpush3.bf16.msra.mxu0 %v6574_v35 }
 0x4f1   : > { %6271 = vmatpush3.bf16.msra.mxu1 %v6575_v37  ;;  %6248 = vmatprep.subr.bf16.mxu0 %v6576_v40 }
 0x4f2   : > { %6272 = vmatprep.subr.bf16.mxu1 %v6577_v42 }
 0x4f4   : > { %6249 = vmatpush3.bf16.msra.mxu0 %v6576_v40 }
 0x4f5   : > { %6273 = vmatpush3.bf16.msra.mxu1 %v6577_v42  ;;  %6250 = vmatprep.subr.bf16.mxu0 %v6578_v45 }
 0x4f6   : > { %6298 = vmatprep.subr.bf16.mxu1 %v6588_v32 }
 0x4f8   : > { %6251 = vmatpush3.bf16.msra.mxu0 %v6578_v45  ;;  %6275 = vmatmul.mubr.bf16.vlgmr.msra.gmra.mxu1 %v4201_v50 }
 0x4f9   : > { %6252 = vmatprep.subr.bf16.mxu0 %v6579_v47  ;;  %6299 = vmatpush3.bf16.msra.mxu1 %v6588_v32 }
 0x4fa   : > { %6300 = vmatprep.subr.bf16.mxu1 %v6589_v58 }
 0x4fc   : > { %6253 = vmatpush3.bf16.msra.mxu0 %v6579_v47 }
 0x4fd   : > { %6278 = vmatprep.subr.bf16.mxu0 %v6580_v51  ;;  %6301 = vmatpush3.bf16.msra.mxu1 %v6589_v58 }
 0x4fe   : > { %6302 = vmatprep.subr.bf16.mxu1 %v6590_v52 }
 0x4ff   : > { %6255 = vmatmul.mubr.bf16.vlgmr.msra.gmra.mxu0 %v4067_v60 }
 0x500   : > { %6279 = vmatpush3.bf16.msra.mxu0 %v6580_v51  ;;  %6294 = vmatprep.mubr.bf16.mxu0 %v7505_v41  ;;  %v6585_v41 = vld [vmem:[%s7736_s7 + $0x450] sm:$0xff]  }
 0x501   : > { %6280 = vmatprep.subr.bf16.mxu0 %v6581_v56  ;;  %6303 = vmatpush3.bf16.msra.mxu1 %v6590_v52 }
 0x502   : > { %6304 = vmatprep.subr.bf16.mxu1 %v6591_v20 }
 0x504   : > { %6281 = vmatpush3.bf16.msra.mxu0 %v6581_v56 }
 0x505   : > { %6282 = vmatprep.subr.bf16.mxu0 %v6582_v57  ;;  %6305 = vmatpush3.bf16.msra.mxu1 %v6591_v20 }
 0x506   : > { %6306 = vmatprep.subr.bf16.mxu1 %v6592_v38 }
 0x508   : > { %6283 = vmatpush3.bf16.msra.mxu0 %v6582_v57 }
 0x509   : > { %6284 = vmatprep.subr.bf16.mxu0 %v6583_v59  ;;  %6307 = vmatpush3.bf16.msra.mxu1 %v6592_v38 }
 0x50a   : > { %6308 = vmatprep.subr.bf16.mxu1 %v6593_v11 }
 0x50c   : > { %6285 = vmatpush3.bf16.msra.mxu0 %v6583_v59 }
 0x50d   : > { %6286 = vmatprep.subr.bf16.mxu0 %v6584_v36  ;;  %6309 = vmatpush3.bf16.msra.mxu1 %v6593_v11 }
 0x50e   : > { %6310 = vmatprep.subr.bf16.mxu1 %v6594_v15 }
 0x510   : > { %6287 = vmatpush3.bf16.msra.mxu0 %v6584_v36 }
 0x511   : > { %6288 = vmatprep.subr.bf16.mxu0 %v6585_v41  ;;  %6311 = vmatpush3.bf16.msra.mxu1 %v6594_v15 }
 0x512   : > { %6312 = vmatprep.subr.bf16.mxu1 %v6595_v16 }
 0x514   : > { %6289 = vmatpush3.bf16.msra.mxu0 %v6585_v41 }
 0x515   : > { %6290 = vmatprep.subr.bf16.mxu0 %v6586_v61  ;;  %6313 = vmatpush3.bf16.msra.mxu1 %v6595_v16 }
 0x518   : > { %6291 = vmatpush3.bf16.msra.mxu0 %v6586_v61 }
 0x519   : > { %6292 = vmatprep.subr.bf16.mxu0 %v6587_v62 }
 0x51c   : > { %6293 = vmatpush3.bf16.msra.mxu0 %v6587_v62 }
 0x51f   : > { %6295 = vmatmul.mubr.bf16.vlgmr.msra.gmra.mxu0 %v4324_v1 }
 0x558   : > { %v6156_v2 = vpop.f32.mrf.mxu1 }
 0x55a   : > { %v3541_v4 = vpop.f32.mrf.mxu1 }
 0x55c   : > { %v6157_v5 = vpop.f32.mrf.mxu1 }
 0x55e   : > { %v3544_v12 = vpop.f32.mrf.mxu1 }
 0x55f   : > { %v6136_v6 = vpop.f32.mrf.mxu0 }
 0x560   : > { %v3550_v7 = vadd.f32 %v6156_v2, %v6136_v6 }
 0x561   : > { %v3445_v8 = vpop.f32.mrf.mxu0 }
 0x562   : > { %v3542_v10 = vadd.f32 %v3541_v4, %v3445_v8 }
 0x563   : > { %v6137_v26 = vpop.f32.mrf.mxu0 }
 0x565   : > { %v3448_v54 = vpop.f32.mrf.mxu0 }
 0x566   : > { %v3545_v14 = vadd.f32 %v3544_v12, %v3448_v54  ;;  %v4544_v54 = vld [vmem:[#allocation3 + $0x7] sm:$0xff] }
 0x578   : > { %v6196_v17 = vpop.f32.mrf.mxu1 }
 0x57a   : > { %v3782_v18 = vpop.f32.mrf.mxu1 }
 0x57c   : > { %v6197_v19 = vpop.f32.mrf.mxu1 }
 0x57e   : > { %v3785_v27 = vpop.f32.mrf.mxu1 }
 0x57f   : > { %v6176_v21 = vpop.f32.mrf.mxu0 }
 0x580   : > { %v3677_v63 = vadd.f32 %v6176_v21, %v3550_v7  ;;  %v4556_v7 = vpop.permute.xlu1 %4555  ;;  %v4545_v21 = vld [vmem:[#allocation3 + $0xf] sm:$0xff] }
 0x581   : > { %v3661_v49 = vpop.f32.mrf.mxu0 }
 0x582   : > { %v3675_v9 = vadd.f32 %v3661_v49, %v3542_v10  ;;  %v3798_v22 = vadd.f32 %v6196_v17, %v3677_v63  ;;  %v4546_v10 = vld [vmem:[#allocation3 + $0x17] sm:$0xff] }
 0x583   : > { %v6177_v23 = vpop.f32.mrf.mxu0 }
 0x584   : > { %v3796_v13 = vadd.f32 %v3782_v18, %v3675_v9  ;;  %v4566_v11 = vpop.permute.xlu1 %4565  ;;  %v4561_v9 = vpop.permute.xlu0 %4560 }
 0x585   : > { %v3664_v24 = vpop.f32.mrf.mxu0 }
 0x586   : > { %v3676_v25 = vadd.f32 %v3664_v24, %v3545_v14 }
 0x588   : > { %v3797_v28 = vadd.f32 %v3785_v27, %v3676_v25 }
 0x598   : > { %v6236_v29 = vpop.f32.mrf.mxu1 }
 0x59a   : > { %v4028_v30 = vpop.f32.mrf.mxu1 }
 0x59c   : > { %v6237_v31 = vpop.f32.mrf.mxu1 }
 0x59e   : > { %v4031_v39 = vpop.f32.mrf.mxu1 }
 0x59f   : > { %v6216_v48 = vpop.f32.mrf.mxu0 }
 0x5a0   : > { %v3923_v3 = vadd.f32 %v6216_v48, %v3798_v22 }
 0x5a1   : > { %v3907_v33 = vpop.f32.mrf.mxu0 }
 0x5a2   : > { %v3921_v34 = vadd.f32 %v3907_v33, %v3796_v13  ;;  %v4044_v35 = vadd.f32 %v6236_v29, %v3923_v3 }
 0x5a3   : > { %v6217_v37 = vpop.f32.mrf.mxu0 }
 0x5a4   : > { %v4042_v53 = vadd.f32 %v4028_v30, %v3921_v34 }
 0x5a5   : > { %v3910_v44 = vpop.f32.mrf.mxu0 }
 0x5a6   : > { %v3922_v50 = vadd.f32 %v3910_v44, %v3797_v28 }
 0x5a8   : > { %v4043_v60 = vadd.f32 %v4031_v39, %v3922_v50 }
 0x5b8   : > { %v6276_v40 = vpop.f32.mrf.mxu1 }
 0x5ba   : > { %v4286_v42 = vpop.f32.mrf.mxu1 }
 0x5bc   : > { %v6277_v43 = vpop.f32.mrf.mxu1 }
 0x5be   : > { %v4289_v62 = vpop.f32.mrf.mxu1 }
 0x5bf   : > { %v6256_v45 = vpop.f32.mrf.mxu0 }
 0x5c0   : > { %v4168_v51 = vadd.f32 %v6256_v45, %v4044_v35 }
 0x5c1   : > { %v4152_v46 = vpop.f32.mrf.mxu0 }
 0x5c2   : > { %v4166_v56 = vadd.f32 %v4152_v46, %v4042_v53  ;;  %v4302_v36 = vadd.f32 %v6276_v40, %v4168_v51 }
 0x5c3   : > { %v6257_v47 = vpop.f32.mrf.mxu0 }
 0x5c4   : > { %v4300_v61 = vadd.f32 %v4286_v42, %v4166_v56 }
 0x5c5   : > { %v4155_v55 = vpop.f32.mrf.mxu0 }
 0x5c6   : > { %v4167_v59 = vadd.f32 %v4155_v55, %v4043_v60 }
 0x5c8   : > { %v4301_v58 = vadd.f32 %v4289_v62, %v4167_v59 }
 0x5df   : > { %v6296_v57 = vpop.f32.mrf.mxu0 }
 0x5e0   : > { %v4425_v0 = vadd.f32 %v6296_v57, %v4302_v36 }
 0x5e1   : > { %v4409_v41 = vpop.f32.mrf.mxu0 }
 0x5e2   : > { %v4423_v32 = vadd.f32 %v4409_v41, %v4300_v61  ;;  %v4428_v38 = vmax.f32 %v4425_v0, 0.0 }
 0x5e3   : > { %v6297_v1 = vpop.f32.mrf.mxu0 }
 0x5e4   : > { %v4426_v2 = vmax.f32 %v4423_v32, 0.0  ;;  %v4430_v6 = vpack.c.bf16 %v4428_v38, %v4428_v38 }
 0x5e5   : > { %v4412_v52 = vpop.f32.mrf.mxu0 }
 0x5e6   : > { %v4424_v20 = vadd.f32 %v4412_v52, %v4301_v58 }
 0x5e8   : > { %v4427_v4 = vmax.f32 %v4424_v20, 0.0 }
 0x5ea   : > { %v4429_v5 = vpack.c.bf16 %v4427_v4, %v4426_v2 }
 0x5ec   : > { %6314 = vmatprep.mubr.bf16.mxu1 %v4429_v5 }
 0x5ed   : > { %6315 = vmatmul.mubr.bf16.vlgmr.msra.gmra.mxu1 %v4430_v6 }
 0x6ad   : > { %v6316_v8 = vpop.f32.mrf.mxu1 }
 0x6ae   : > { %v4549_v26 = vadd.f32 %v6316_v8, %v4546_v10 }
 0x6af   : > { %v4530_v12 = vpop.f32.mrf.mxu1 }
 0x6b0   : > { %v4570_v14 = vmul.f32 %v4566_v11, %v4549_v26  ;;  %v4547_v15 = vadd.f32 %v4544_v54, %v4530_v12 }
 0x6b1   : > { %v6317_v16 = vpop.f32.mrf.mxu1 }
 0x6b2   : > { %4573 = vst [vmem:[#allocation3 + $0x17] sm:$0xff] %v4570_v14  ;;  %v4579_v17 = vmax.f32 %v4570_v14, 0.0  ;;  %v4568_v18 = vmul.f32 %v4556_v7, %v4547_v15 }
 0x6b3   : > { %v4533_v19 = vpop.f32.mrf.mxu1 }
 0x6b4   : > { %4582 = vst [vmem:[%s332_s27 + $0x10] sm:$0xff] %v4579_v17  ;;  %4571 = vst [vmem:[#allocation3 + $0x7] sm:$0xff] %v4568_v18  ;;  %v4577_v63 = vmax.f32 %v4568_v18, 0.0  ;;  %v4548_v49 = vadd.f32 %v4545_v21, %v4533_v19 }
 0x6b6   : > { %4580 = vst [vmem:[%s332_s27] sm:$0xff] %v4577_v63  ;;  %v4569_v22 = vmul.f32 %v4561_v9, %v4548_v49 }
 0x6b8   : > { %4572 = vst [vmem:[#allocation3 + $0xf] sm:$0xff] %v4569_v22  ;;  %v4578_v23 = vmax.f32 %v4569_v22, 0.0 }
 0x6ba   : > { %4581 = vst [vmem:[%s332_s27 + $0x8] sm:$0xff] %v4578_v23 }
 0x6bb PF: > { %s19_s30 = sadd.s32 1, %s6602_s30  }
 0x6bc   : > { %p16_p4 = scmp.ge.s32.totalorder %s19_s30, 4  }
 0x6be   :  { %18 = sbr.rel (!%p16_p4) target bundleno = 1 (0x1), region = 112 }

</bundles_post_ra>
